<compile_context>
chip_gen: v6e
topology: v6e:2x2x1
jax: 0.10.0
libtpu: 0.0.40
codegen_flags: <defaults>
</compile_context>

<pallas_src>
import math
import functools

import jax
import jax.numpy as jnp
from jax import lax
from jax.experimental import pallas as pl
from jax.experimental.pallas import tpu as pltpu

_BF16 = jnp.bfloat16


# ----------------------------------------------------------------------------
# Slab layout (shared by the packer and the kernel; offsets are static ints)
# ----------------------------------------------------------------------------
def _slab_layout(dim_hidden, dim_output, align=128):
    dV = dim_hidden
    w_widths = [("qkv2", 3 * dV), ("qkv3", 3 * dV), ("o1", dV), ("o2", dV),
                ("o3", dV), ("kv_pma", 2 * dV), ("o_pma", dV), ("dec", dim_output)]
    b_widths = [("qkv1", 3 * dV), ("qkv2", 3 * dV), ("qkv3", 3 * dV),
                ("o1", dV), ("o2", dV), ("o3", dV),
                ("q_seed", dV), ("kv_pma", 2 * dV), ("o_pma", dV), ("dec", dim_output)]

    def offsets(widths):
        off, cur = {}, 0
        for name, w in widths:
            off[name] = cur
            cur += -(-w // align) * align
        return off, cur

    w_off, w_cols = offsets(w_widths)
    b_off, b_cols = offsets(b_widths)
    return w_off, w_cols, b_off, b_cols


# ----------------------------------------------------------------------------
# In-kernel helpers
# ----------------------------------------------------------------------------
def _layernorm(x, eps=1e-5):
    # nn.LayerNorm(dim_V, elementwise_affine=False)
    mu = jnp.mean(x, axis=-1, keepdims=True)
    xc = x - mu
    var = jnp.mean(xc * xc, axis=-1, keepdims=True)
    return xc * lax.rsqrt(var + eps)


def _softmax_lanes(s):
    m = jnp.max(s, axis=-1, keepdims=True)
    p = jnp.exp(s - m)
    return p * pl.reciprocal(jnp.sum(p, axis=-1, keepdims=True), approx=True)


def _attn_residual(Q, K, V, num_heads):
    """Q + concat_h softmax(Qh Kh^T) Vh   (1/sqrt(dim_V) pre-folded into K)."""
    dV = Q.shape[-1]
    ds_ = dV // num_heads
    Qb, Kb, Vb = Q.astype(_BF16), K.astype(_BF16), V.astype(_BF16)  # hoisted casts
    outs = []
    for h in range(num_heads):
        sl = slice(h * ds_, (h + 1) * ds_)
        s = lax.dot_general(Qb[:, sl], Kb[:, sl], (((1,), (1,)), ((), ())),
                            preferred_element_type=jnp.float32)
        A = _softmax_lanes(s)
        outs.append(jnp.dot(A.astype(_BF16), Vb[:, sl],
                            preferred_element_type=jnp.float32))
    return Q + jnp.concatenate(outs, axis=-1)


def _mab_post(O, w_o, b_o, use_ln):
    # ln0 -> O + sigmoid(fc_o(O)) -> ln1   (matches the module's sigmoid gate)
    if use_ln:
        O = _layernorm(O)
    O = O + jax.nn.sigmoid(
        jnp.dot(O.astype(_BF16), w_o, preferred_element_type=jnp.float32) + b_o)
    if use_ln:
        O = _layernorm(O)
    return O


# ----------------------------------------------------------------------------
# Fused forward kernel (one batch element per grid step)
# ----------------------------------------------------------------------------
def _quan8_kernel(patches_ref, w1_ref, w_slab_ref, b_slab_ref, o_ref,
                  *, dV, num_heads, dim_output, use_ln, w_off, b_off):
    H = num_heads

    def wseg(name, width):             # static, 128-lane-aligned ref slices
        o = w_off[name]
        return w_slab_ref[:, o:o + width]

    def bseg(name, width):
        o = b_off[name]
        return b_slab_ref[:, o:o + width]

    x = patches_ref[...]               # (set_size, P*ks*ks)  f32 im2col patches

    # ---- SAB1: conv + BN + fc_{q,k,v} folded into a single f32 matmul ----
    qkv = jnp.dot(x, w1_ref[...], preferred_element_type=jnp.float32) + bseg("qkv1", 3 * dV)
    h = _attn_residual(qkv[:, :dV], qkv[:, dV:2 * dV], qkv[:, 2 * dV:], H)
    h = _mab_post(h, wseg("o1", dV), bseg("o1", dV), use_ln)

    # ---- SAB2 ----
    hb = h.astype(_BF16)
    qkv = jnp.dot(hb, wseg("qkv2", 3 * dV),
                  preferred_element_type=jnp.float32) + bseg("qkv2", 3 * dV)
    h = _attn_residual(qkv[:, :dV], qkv[:, dV:2 * dV], qkv[:, 2 * dV:], H)
    h = _mab_post(h, wseg("o2", dV), bseg("o2", dV), use_ln)

    # ---- SAB3 (+ encoder's elementwise sigmoid) ----
    hb = h.astype(_BF16)
    qkv = jnp.dot(hb, wseg("qkv3", 3 * dV),
                  preferred_element_type=jnp.float32) + bseg("qkv3", 3 * dV)
    h = _attn_residual(qkv[:, :dV], qkv[:, dV:2 * dV], qkv[:, 2 * dV:], H)
    h = _mab_post(h, wseg("o3", dV), bseg("o3", dV), use_ln)
    h = jax.nn.sigmoid(h)

    # ---- PMA, seed 0 only (dec(X)[:, 0] only uses seed 0; MAB rows independent) ----
    hb = h.astype(_BF16)
    kv = jnp.dot(hb, wseg("kv_pma", 2 * dV),
                 preferred_element_type=jnp.float32) + bseg("kv_pma", 2 * dV)
    q_seed = bseg("q_seed", dV)        # fc_q(S[0]) precomputed host-side, (1, dV) f32
    d = _attn_residual(q_seed, kv[:, :dV], kv[:, dV:], H)
    d = _mab_post(d, wseg("o_pma", dV), bseg("o_pma", dV), use_ln)

    # ---- decoder Linear + Sigmoid ----
    out = jax.nn.sigmoid(
        jnp.dot(d.astype(_BF16), wseg("dec", dim_output),
                preferred_element_type=jnp.float32) + bseg("dec", dim_output))
    o_ref[...] = out.astype(o_ref.dtype)


def quan8_forward(X, params, *, set_size, channel, ks, st, num_heads,
                  dim_hidden, dim_output, use_ln=True):
    Nr = Nc = 4
    rNr = (Nr - ks) // st + 1
    rNc = (Nc - ks) // st + 1
    P = rNr * rNc
    K2 = ks * ks
    B = X.shape[0]
    M = B * set_size

    # im2col (host-side XLA glue, tiny): column order (patch-major, within-patch-minor)
    X4 = X.reshape(M, Nr, Nc).astype(jnp.float32)
    if ks == st and rNr * ks == Nr and rNc * ks == Nc:
        patches = X4.reshape(M, rNr, ks, rNc, ks).transpose(0, 1, 3, 2, 4).reshape(M, P * K2)
    else:
        cols = []
        for i in range(rNr):
            for j in range(rNc):
                cols.append(X4[:, i * st:i * st + ks, j * st:j * st + ks].reshape(M, K2))
        patches = jnp.stack(cols, axis=1).reshape(M, P * K2)
    patches = patches.reshape(B, set_size, P * K2)

    w_off, _, b_off, _ = _slab_layout(dim_hidden, dim_output)
    kern = functools.partial(
        _quan8_kernel, dV=dim_hidden, num_heads=num_heads, dim_output=dim_output,
        use_ln=use_ln, w_off=w_off, b_off=b_off)

    out = pl.pallas_call(
        kern,
        out_shape=jax.ShapeDtypeStruct((B, 1, dim_output), jnp.float32),
        grid=(B,),
        in_specs=[
            pl.BlockSpec((None, set_size, P * K2), lambda b: (b, 0, 0)),
            pl.BlockSpec(params["w1_qkv"].shape, lambda b: (0, 0)),
            pl.BlockSpec(params["w_slab"].shape, lambda b: (0, 0)),
            pl.BlockSpec(params["b_slab"].shape, lambda b: (0, 0)),
        ],
        out_specs=pl.BlockSpec((None, 1, dim_output), lambda b: (b, 0, 0)),
        compiler_params=pltpu.CompilerParams(
            dimension_semantics=("parallel",),
            vmem_limit_bytes=32 * 1024 * 1024),
    )(patches, params["w1_qkv"], params["w_slab"], params["b_slab"])
    return out[:, 0, :]


# ----------------------------------------------------------------------------
# Parameter construction + host-side folding / packing
# ----------------------------------------------------------------------------
def _init_linear(key, d_in, d_out):
    k1, k2 = jax.random.split(key)
    bound = 1.0 / math.sqrt(d_in)
    w = jax.random.uniform(k1, (d_in, d_out), jnp.float32, -bound, bound)   # W^T layout
    b = jax.random.uniform(k2, (1, d_out), jnp.float32, -bound, bound)
    return w, b


def make_params(key, *, channel, ks, st, dim_hidden, dim_output, p_outputs):
    Nr = Nc = 4
    rNr = (Nr - ks) // st + 1
    rNc = (Nc - ks) // st + 1
    P = rNr * rNc
    K2 = ks * ks
    d_in = channel * P
    dV = dim_hidden
    inv_scale = 1.0 / math.sqrt(dV)    # torch divides scores by sqrt(dim_V)

    keys = jax.random.split(key, 8)
    # Conv2d(1, channel, ks, st, bias=False), flattened (channel, ks*ks)
    cbound = 1.0 / math.sqrt(K2)
    conv_w = jax.random.uniform(keys[0], (channel, K2), jnp.float32, -cbound, cbound)
    # BatchNorm2d(channel), eval mode -> per-channel scale/shift
    gamma = 1.0 + 0.1 * jax.random.normal(keys[1], (channel,), jnp.float32)
    beta = 0.1 * jax.random.normal(keys[2], (channel,), jnp.float32)
    rmean = 0.05 * jax.random.normal(keys[3], (channel,), jnp.float32)
    rvar = 1.0 + 0.1 * jax.random.uniform(keys[4], (channel,), jnp.float32)
    eps = 1e-5
    bn_scale = gamma / jnp.sqrt(rvar + eps)
    bn_shift = beta - rmean * bn_scale

    def mab_params(k, d_q, d_k):
        ks_ = jax.random.split(k, 4)
        wq, bq = _init_linear(ks_[0], d_q, dV)
        wk, bk = _init_linear(ks_[1], d_k, dV)
        wv, bv = _init_linear(ks_[2], d_k, dV)
        wo, bo = _init_linear(ks_[3], dV, dV)
        # fold 1/sqrt(dim_V) into fc_k (K only feeds Q K^T; residual Q stays unscaled)
        return wq, bq, wk * inv_scale, bk * inv_scale, wv, bv, wo, bo

    mk = jax.random.split(keys[5], 4)
    sab1 = mab_params(mk[0], d_in, d_in)
    sab2 = mab_params(mk[1], dV, dV)
    sab3 = mab_params(mk[2], dV, dV)
    pma = mab_params(mk[3], dV, dV)

    # PMA seed S (num_seeds, dim); only seed 0 is consumed downstream
    sbound = math.sqrt(6.0 / (p_outputs + dV))
    S = jax.random.uniform(keys[6], (p_outputs, dV), jnp.float32, -sbound, sbound)
    dec_w, dec_b = _init_linear(keys[7], dV, dim_output)

    # ---- fuse QKV / KV, fold conv + BN into SAB1, precompute fc_q(S[0]) ----
    def fuse_qkv(p):
        wq, bq, wk, bk, wv, bv, wo, bo = p
        return (jnp.concatenate([wq, wk, wv], axis=1),
                jnp.concatenate([bq, bk, bv], axis=1), wo, bo)

    w_qkv1, b_qkv1, wo1, bo1 = fuse_qkv(sab1)
    w_qkv2, b_qkv2, wo2, bo2 = fuse_qkv(sab2)
    w_qkv3, b_qkv3, wo3, bo3 = fuse_qkv(sab3)
    wq_p, bq_p, wk_p, bk_p, wv_p, bv_p, wo_p, bo_p = pma
    w_kv_p = jnp.concatenate([wk_p, wv_p], axis=1)
    b_kv_p = jnp.concatenate([bk_p, bv_p], axis=1)
    q_seed = S[0:1, :] @ wq_p + bq_p                       # (1, dV)

    # feat[m, c*P+p] = sum_k patches[m, p*K2+k] * conv_w[c,k]; fold BN scale + shift:
    #   w1_qkv[p*K2+k, j] = sum_c conv_w[c,k]*bn_scale[c] * w_qkv1[c*P+p, j]
    w_qkv1_r = w_qkv1.reshape(channel, P, 3 * dV)
    w1_qkv = jnp.einsum("ck,cpj->pkj", conv_w * bn_scale[:, None], w_qkv1_r)
    w1_qkv = w1_qkv.reshape(P * K2, 3 * dV)                # kept f32 (first layer)
    shift_big = jnp.repeat(bn_shift, P)[None, :]           # (1, channel*P)
    b1_qkv = shift_big @ w_qkv1 + b_qkv1                   # (1, 3*dV)

    # ---- pack into one bf16 weight slab + one f32 bias/vector slab ----
    w_off, w_cols, b_off, b_cols = _slab_layout(dV, dim_output)
    w_slab = jnp.zeros((dV, w_cols), jnp.float32)
    for name, arr in [("qkv2", w_qkv2), ("qkv3", w_qkv3), ("o1", wo1), ("o2", wo2),
                      ("o3", wo3), ("kv_pma", w_kv_p), ("o_pma", wo_p), ("dec", dec_w)]:
        w_slab = w_slab.at[:, w_off[name]:w_off[name] + arr.shape[1]].set(arr)
    b_slab = jnp.zeros((1, b_cols), jnp.float32)
    for name, arr in [("qkv1", b1_qkv), ("qkv2", b_qkv2), ("qkv3", b_qkv3),
                      ("o1", bo1), ("o2", bo2), ("o3", bo3), ("q_seed", q_seed),
                      ("kv_pma", b_kv_p), ("o_pma", bo_p), ("dec", dec_b)]:
        b_slab = b_slab.at[:, b_off[name]:b_off[name] + arr.shape[1]].set(arr)

    return {"w1_qkv": w1_qkv,
            "w_slab": w_slab.astype(jnp.bfloat16),
            "b_slab": b_slab}


# ----------------------------------------------------------------------------
if __name__ == "__main__":
    # Small config consistent with the module (Nr=Nc=4 fixed inside QuAN8).
    B = 2
    set_size = 8
    channel = 4
    dim_output = 3
    kersize = 2
    stride = 2
    dim_hidden = 32
    num_heads = 4
    p_outputs = 4

    key = jax.random.PRNGKey(0)
    kx, kp = jax.random.split(key)
    # input X: (B, set_size, Nr*Nc); the forward views it as (-1, 1, 4, 4)
    X = jax.random.normal(kx, (B, set_size, 16), jnp.float32)
    params = make_params(kp, channel=channel, ks=kersize, st=stride,
                         dim_hidden=dim_hidden, dim_output=dim_output,
                         p_outputs=p_outputs)

    fwd = jax.jit(functools.partial(
        quan8_forward, set_size=set_size, channel=channel, ks=kersize, st=stride,
        num_heads=num_heads, dim_hidden=dim_hidden, dim_output=dim_output))
    out = fwd(X, params)
    jax.block_until_ready(out)
    assert out.shape == (B, dim_output)
    assert bool(jnp.all(jnp.isfinite(out)))
    print("KERNEL_OK")
</pallas_src>

<mosaic_0001>
module attributes {stable_mosaic.version = 11 : i64} {
  func.func @_quan8_kernel(%arg0: i32, %arg1: memref<1x8x16xf32, #tpu.memory_space<vmem>>, %arg2: memref<16x96xf32, #tpu.memory_space<vmem>>, %arg3: memref<32x1024xbf16, #tpu.memory_space<vmem>>, %arg4: memref<1x1280xf32, #tpu.memory_space<vmem>>, %arg5: memref<1x1x3xf32, #tpu.memory_space<vmem>>) attributes {dimension_semantics = [#tpu.dimension_semantics<parallel>], iteration_bounds = array<i64: 2>, scalar_prefetch = 0 : i64, scratch_operands = 0 : i64, tpu.core_type = #tpu.core_type<tc>, window_params = [{transform_indices = @transform_0, window_bounds = array<i64: 1, 8, 16>}, {pipeline_mode = #tpu.pipeline_mode<synchronous>, transform_indices = @transform_1, window_bounds = array<i64: 16, 96>}, {pipeline_mode = #tpu.pipeline_mode<synchronous>, transform_indices = @transform_2, window_bounds = array<i64: 32, 1024>}, {pipeline_mode = #tpu.pipeline_mode<synchronous>, transform_indices = @transform_3, window_bounds = array<i64: 1, 1280>}, {transform_indices = @transform_4, window_bounds = array<i64: 1, 1, 3>}]} {
    %c0 = arith.constant 0 : index
    %c0_0 = arith.constant 0 : index
    %c0_1 = arith.constant 0 : index
    %0 = vector.load %arg1[%c0, %c0_0, %c0_1] : memref<1x8x16xf32, #tpu.memory_space<vmem>>, vector<1x8x16xf32>
    %1 = vector.shape_cast %0 : vector<1x8x16xf32> to vector<8x16xf32>
    %c0_2 = arith.constant 0 : index
    %c0_3 = arith.constant 0 : index
    %2 = vector.load %arg2[%c0_2, %c0_3] : memref<16x96xf32, #tpu.memory_space<vmem>>, vector<16x96xf32>
    %cst = arith.constant dense<0.000000e+00> : vector<8x96xf32>
    %3 = tpu.matmul %1, %2, %cst {dimension_numbers = #tpu.dot_dimension_numbers<[1], [0], [0], [1], [0, 0, 1, 1], [], []>} : vector<8x16xf32>, vector<16x96xf32>, vector<8x96xf32> -> vector<8x96xf32>
    %c0_4 = arith.constant 0 : index
    %c0_5 = arith.constant 0 : index
    %4 = vector.load %arg4[%c0_4, %c0_5] : memref<1x1280xf32, #tpu.memory_space<vmem>>, vector<1x96xf32>
    %5 = vector.broadcast %4 : vector<1x96xf32> to vector<8x96xf32>
    %6 = arith.addf %3, %5 : vector<8x96xf32>
    %7 = vector.extract_strided_slice %6 {offsets = [0, 0], sizes = [8, 32], strides = [1, 1]} : vector<8x96xf32> to vector<8x32xf32>
    %8 = vector.extract_strided_slice %6 {offsets = [0, 32], sizes = [8, 32], strides = [1, 1]} : vector<8x96xf32> to vector<8x32xf32>
    %9 = vector.extract_strided_slice %6 {offsets = [0, 64], sizes = [8, 32], strides = [1, 1]} : vector<8x96xf32> to vector<8x32xf32>
    %10 = arith.truncf %7 : vector<8x32xf32> to vector<8x32xbf16>
    %11 = arith.truncf %8 : vector<8x32xf32> to vector<8x32xbf16>
    %12 = arith.truncf %9 : vector<8x32xf32> to vector<8x32xbf16>
    %13 = vector.extract_strided_slice %10 {offsets = [0, 0], sizes = [8, 8], strides = [1, 1]} : vector<8x32xbf16> to vector<8x8xbf16>
    %14 = vector.extract_strided_slice %11 {offsets = [0, 0], sizes = [8, 8], strides = [1, 1]} : vector<8x32xbf16> to vector<8x8xbf16>
    %cst_6 = arith.constant dense<0.000000e+00> : vector<8x8xf32>
    %15 = tpu.matmul %13, %14, %cst_6 {dimension_numbers = #tpu.dot_dimension_numbers<[1], [1], [0], [0], [0, 0, 1, 0], [], []>} : vector<8x8xbf16>, vector<8x8xbf16>, vector<8x8xf32> -> vector<8x8xf32>
    %cst_7 = arith.constant dense<0xFF800000> : vector<8xf32>
    %16 = vector.multi_reduction <maximumf>, %15, %cst_7 [1] : vector<8x8xf32> to vector<8xf32>
    %17 = vector.shape_cast %16 : vector<8xf32> to vector<8x1xf32>
    %18 = vector.broadcast %17 : vector<8x1xf32> to vector<8x8xf32>
    %19 = arith.subf %15, %18 : vector<8x8xf32>
    %20 = math.exp %19 : vector<8x8xf32>
    %cst_8 = arith.constant dense<0.000000e+00> : vector<8xf32>
    %21 = vector.multi_reduction <add>, %20, %cst_8 [1] : vector<8x8xf32> to vector<8xf32>
    %22 = vector.shape_cast %21 : vector<8xf32> to vector<8x1xf32>
    %23 = tpu.reciprocal %22 {approx = true} : vector<8x1xf32> -> vector<8x1xf32>
    %24 = vector.broadcast %23 : vector<8x1xf32> to vector<8x8xf32>
    %25 = arith.mulf %20, %24 : vector<8x8xf32>
    %26 = arith.truncf %25 : vector<8x8xf32> to vector<8x8xbf16>
    %27 = vector.extract_strided_slice %12 {offsets = [0, 0], sizes = [8, 8], strides = [1, 1]} : vector<8x32xbf16> to vector<8x8xbf16>
    %cst_9 = arith.constant dense<0.000000e+00> : vector<8x8xf32>
    %28 = tpu.matmul %26, %27, %cst_9 {dimension_numbers = #tpu.dot_dimension_numbers<[1], [0], [0], [1], [0, 0, 1, 1], [], []>} : vector<8x8xbf16>, vector<8x8xbf16>, vector<8x8xf32> -> vector<8x8xf32>
    %29 = vector.extract_strided_slice %10 {offsets = [0, 8], sizes = [8, 8], strides = [1, 1]} : vector<8x32xbf16> to vector<8x8xbf16>
    %30 = vector.extract_strided_slice %11 {offsets = [0, 8], sizes = [8, 8], strides = [1, 1]} : vector<8x32xbf16> to vector<8x8xbf16>
    %cst_10 = arith.constant dense<0.000000e+00> : vector<8x8xf32>
    %31 = tpu.matmul %29, %30, %cst_10 {dimension_numbers = #tpu.dot_dimension_numbers<[1], [1], [0], [0], [0, 0, 1, 0], [], []>} : vector<8x8xbf16>, vector<8x8xbf16>, vector<8x8xf32> -> vector<8x8xf32>
    %cst_11 = arith.constant dense<0xFF800000> : vector<8xf32>
    %32 = vector.multi_reduction <maximumf>, %31, %cst_11 [1] : vector<8x8xf32> to vector<8xf32>
    %33 = vector.shape_cast %32 : vector<8xf32> to vector<8x1xf32>
    %34 = vector.broadcast %33 : vector<8x1xf32> to vector<8x8xf32>
    %35 = arith.subf %31, %34 : vector<8x8xf32>
    %36 = math.exp %35 : vector<8x8xf32>
    %cst_12 = arith.constant dense<0.000000e+00> : vector<8xf32>
    %37 = vector.multi_reduction <add>, %36, %cst_12 [1] : vector<8x8xf32> to vector<8xf32>
    %38 = vector.shape_cast %37 : vector<8xf32> to vector<8x1xf32>
    %39 = tpu.reciprocal %38 {approx = true} : vector<8x1xf32> -> vector<8x1xf32>
    %40 = vector.broadcast %39 : vector<8x1xf32> to vector<8x8xf32>
    %41 = arith.mulf %36, %40 : vector<8x8xf32>
    %42 = arith.truncf %41 : vector<8x8xf32> to vector<8x8xbf16>
    %43 = vector.extract_strided_slice %12 {offsets = [0, 8], sizes = [8, 8], strides = [1, 1]} : vector<8x32xbf16> to vector<8x8xbf16>
    %cst_13 = arith.constant dense<0.000000e+00> : vector<8x8xf32>
    %44 = tpu.matmul %42, %43, %cst_13 {dimension_numbers = #tpu.dot_dimension_numbers<[1], [0], [0], [1], [0, 0, 1, 1], [], []>} : vector<8x8xbf16>, vector<8x8xbf16>, vector<8x8xf32> -> vector<8x8xf32>
    %45 = vector.extract_strided_slice %10 {offsets = [0, 16], sizes = [8, 8], strides = [1, 1]} : vector<8x32xbf16> to vector<8x8xbf16>
    %46 = vector.extract_strided_slice %11 {offsets = [0, 16], sizes = [8, 8], strides = [1, 1]} : vector<8x32xbf16> to vector<8x8xbf16>
    %cst_14 = arith.constant dense<0.000000e+00> : vector<8x8xf32>
    %47 = tpu.matmul %45, %46, %cst_14 {dimension_numbers = #tpu.dot_dimension_numbers<[1], [1], [0], [0], [0, 0, 1, 0], [], []>} : vector<8x8xbf16>, vector<8x8xbf16>, vector<8x8xf32> -> vector<8x8xf32>
    %cst_15 = arith.constant dense<0xFF800000> : vector<8xf32>
    %48 = vector.multi_reduction <maximumf>, %47, %cst_15 [1] : vector<8x8xf32> to vector<8xf32>
    %49 = vector.shape_cast %48 : vector<8xf32> to vector<8x1xf32>
    %50 = vector.broadcast %49 : vector<8x1xf32> to vector<8x8xf32>
    %51 = arith.subf %47, %50 : vector<8x8xf32>
    %52 = math.exp %51 : vector<8x8xf32>
    %cst_16 = arith.constant dense<0.000000e+00> : vector<8xf32>
    %53 = vector.multi_reduction <add>, %52, %cst_16 [1] : vector<8x8xf32> to vector<8xf32>
    %54 = vector.shape_cast %53 : vector<8xf32> to vector<8x1xf32>
    %55 = tpu.reciprocal %54 {approx = true} : vector<8x1xf32> -> vector<8x1xf32>
    %56 = vector.broadcast %55 : vector<8x1xf32> to vector<8x8xf32>
    %57 = arith.mulf %52, %56 : vector<8x8xf32>
    %58 = arith.truncf %57 : vector<8x8xf32> to vector<8x8xbf16>
    %59 = vector.extract_strided_slice %12 {offsets = [0, 16], sizes = [8, 8], strides = [1, 1]} : vector<8x32xbf16> to vector<8x8xbf16>
    %cst_17 = arith.constant dense<0.000000e+00> : vector<8x8xf32>
    %60 = tpu.matmul %58, %59, %cst_17 {dimension_numbers = #tpu.dot_dimension_numbers<[1], [0], [0], [1], [0, 0, 1, 1], [], []>} : vector<8x8xbf16>, vector<8x8xbf16>, vector<8x8xf32> -> vector<8x8xf32>
    %61 = vector.extract_strided_slice %10 {offsets = [0, 24], sizes = [8, 8], strides = [1, 1]} : vector<8x32xbf16> to vector<8x8xbf16>
    %62 = vector.extract_strided_slice %11 {offsets = [0, 24], sizes = [8, 8], strides = [1, 1]} : vector<8x32xbf16> to vector<8x8xbf16>
    %cst_18 = arith.constant dense<0.000000e+00> : vector<8x8xf32>
    %63 = tpu.matmul %61, %62, %cst_18 {dimension_numbers = #tpu.dot_dimension_numbers<[1], [1], [0], [0], [0, 0, 1, 0], [], []>} : vector<8x8xbf16>, vector<8x8xbf16>, vector<8x8xf32> -> vector<8x8xf32>
    %cst_19 = arith.constant dense<0xFF800000> : vector<8xf32>
    %64 = vector.multi_reduction <maximumf>, %63, %cst_19 [1] : vector<8x8xf32> to vector<8xf32>
    %65 = vector.shape_cast %64 : vector<8xf32> to vector<8x1xf32>
    %66 = vector.broadcast %65 : vector<8x1xf32> to vector<8x8xf32>
    %67 = arith.subf %63, %66 : vector<8x8xf32>
    %68 = math.exp %67 : vector<8x8xf32>
    %cst_20 = arith.constant dense<0.000000e+00> : vector<8xf32>
    %69 = vector.multi_reduction <add>, %68, %cst_20 [1] : vector<8x8xf32> to vector<8xf32>
    %70 = vector.shape_cast %69 : vector<8xf32> to vector<8x1xf32>
    %71 = tpu.reciprocal %70 {approx = true} : vector<8x1xf32> -> vector<8x1xf32>
    %72 = vector.broadcast %71 : vector<8x1xf32> to vector<8x8xf32>
    %73 = arith.mulf %68, %72 : vector<8x8xf32>
    %74 = arith.truncf %73 : vector<8x8xf32> to vector<8x8xbf16>
    %75 = vector.extract_strided_slice %12 {offsets = [0, 24], sizes = [8, 8], strides = [1, 1]} : vector<8x32xbf16> to vector<8x8xbf16>
    %cst_21 = arith.constant dense<0.000000e+00> : vector<8x8xf32>
    %76 = tpu.matmul %74, %75, %cst_21 {dimension_numbers = #tpu.dot_dimension_numbers<[1], [0], [0], [1], [0, 0, 1, 1], [], []>} : vector<8x8xbf16>, vector<8x8xbf16>, vector<8x8xf32> -> vector<8x8xf32>
    %77 = tpu.concatenate %28, %44, %60, %76 in 1 : vector<8x8xf32>, vector<8x8xf32>, vector<8x8xf32>, vector<8x8xf32> -> vector<8x32xf32>
    %78 = arith.addf %7, %77 : vector<8x32xf32>
    %c0_22 = arith.constant 0 : index
    %c256 = arith.constant 256 : index
    %79 = vector.load %arg3[%c0_22, %c256] : memref<32x1024xbf16, #tpu.memory_space<vmem>>, vector<32x32xbf16>
    %c0_23 = arith.constant 0 : index
    %c384 = arith.constant 384 : index
    %80 = vector.load %arg4[%c0_23, %c384] : memref<1x1280xf32, #tpu.memory_space<vmem>>, vector<1x32xf32>
    %cst_24 = arith.constant dense<0.000000e+00> : vector<8xf32>
    %81 = vector.multi_reduction <add>, %78, %cst_24 [1] : vector<8x32xf32> to vector<8xf32>
    %82 = vector.shape_cast %81 : vector<8xf32> to vector<8x1xf32>
    %cst_25 = arith.constant 3.200000e+01 : f32
    %83 = vector.broadcast %cst_25 : f32 to vector<8x1xf32>
    %84 = arith.divf %82, %83 : vector<8x1xf32>
    %85 = vector.broadcast %84 : vector<8x1xf32> to vector<8x32xf32>
    %86 = arith.subf %78, %85 : vector<8x32xf32>
    %87 = arith.mulf %86, %86 : vector<8x32xf32>
    %cst_26 = arith.constant dense<0.000000e+00> : vector<8xf32>
    %88 = vector.multi_reduction <add>, %87, %cst_26 [1] : vector<8x32xf32> to vector<8xf32>
    %89 = vector.shape_cast %88 : vector<8xf32> to vector<8x1xf32>
    %cst_27 = arith.constant 3.200000e+01 : f32
    %90 = vector.broadcast %cst_27 : f32 to vector<8x1xf32>
    %91 = arith.divf %89, %90 : vector<8x1xf32>
    %cst_28 = arith.constant 9.99999974E-6 : f32
    %92 = vector.broadcast %cst_28 : f32 to vector<8x1xf32>
    %93 = arith.addf %91, %92 : vector<8x1xf32>
    %94 = math.rsqrt %93 : vector<8x1xf32>
    %95 = vector.broadcast %94 : vector<8x1xf32> to vector<8x32xf32>
    %96 = arith.mulf %86, %95 : vector<8x32xf32>
    %97 = arith.truncf %96 : vector<8x32xf32> to vector<8x32xbf16>
    %cst_29 = arith.constant dense<0.000000e+00> : vector<8x32xf32>
    %98 = tpu.matmul %97, %79, %cst_29 {dimension_numbers = #tpu.dot_dimension_numbers<[1], [0], [0], [1], [0, 0, 1, 1], [], []>} : vector<8x32xbf16>, vector<32x32xbf16>, vector<8x32xf32> -> vector<8x32xf32>
    %99 = vector.broadcast %80 : vector<1x32xf32> to vector<8x32xf32>
    %100 = arith.addf %98, %99 : vector<8x32xf32>
    %101 = arith.negf %100 : vector<8x32xf32>
    %102 = math.exp %101 : vector<8x32xf32>
    %cst_30 = arith.constant 1.000000e+00 : f32
    %103 = vector.broadcast %cst_30 : f32 to vector<8x32xf32>
    %104 = arith.addf %103, %102 : vector<8x32xf32>
    %105 = arith.divf %103, %104 : vector<8x32xf32>
    %106 = arith.addf %96, %105 : vector<8x32xf32>
    %cst_31 = arith.constant dense<0.000000e+00> : vector<8xf32>
    %107 = vector.multi_reduction <add>, %106, %cst_31 [1] : vector<8x32xf32> to vector<8xf32>
    %108 = vector.shape_cast %107 : vector<8xf32> to vector<8x1xf32>
    %cst_32 = arith.constant 3.200000e+01 : f32
    %109 = vector.broadcast %cst_32 : f32 to vector<8x1xf32>
    %110 = arith.divf %108, %109 : vector<8x1xf32>
    %111 = vector.broadcast %110 : vector<8x1xf32> to vector<8x32xf32>
    %112 = arith.subf %106, %111 : vector<8x32xf32>
    %113 = arith.mulf %112, %112 : vector<8x32xf32>
    %cst_33 = arith.constant dense<0.000000e+00> : vector<8xf32>
    %114 = vector.multi_reduction <add>, %113, %cst_33 [1] : vector<8x32xf32> to vector<8xf32>
    %115 = vector.shape_cast %114 : vector<8xf32> to vector<8x1xf32>
    %cst_34 = arith.constant 3.200000e+01 : f32
    %116 = vector.broadcast %cst_34 : f32 to vector<8x1xf32>
    %117 = arith.divf %115, %116 : vector<8x1xf32>
    %cst_35 = arith.constant 9.99999974E-6 : f32
    %118 = vector.broadcast %cst_35 : f32 to vector<8x1xf32>
    %119 = arith.addf %117, %118 : vector<8x1xf32>
    %120 = math.rsqrt %119 : vector<8x1xf32>
    %121 = vector.broadcast %120 : vector<8x1xf32> to vector<8x32xf32>
    %122 = arith.mulf %112, %121 : vector<8x32xf32>
    %123 = arith.truncf %122 : vector<8x32xf32> to vector<8x32xbf16>
    %c0_36 = arith.constant 0 : index
    %c0_37 = arith.constant 0 : index
    %124 = vector.load %arg3[%c0_36, %c0_37] : memref<32x1024xbf16, #tpu.memory_space<vmem>>, vector<32x96xbf16>
    %cst_38 = arith.constant dense<0.000000e+00> : vector<8x96xf32>
    %125 = tpu.matmul %123, %124, %cst_38 {dimension_numbers = #tpu.dot_dimension_numbers<[1], [0], [0], [1], [0, 0, 1, 1], [], []>} : vector<8x32xbf16>, vector<32x96xbf16>, vector<8x96xf32> -> vector<8x96xf32>
    %c0_39 = arith.constant 0 : index
    %c128 = arith.constant 128 : index
    %126 = vector.load %arg4[%c0_39, %c128] : memref<1x1280xf32, #tpu.memory_space<vmem>>, vector<1x96xf32>
    %127 = vector.broadcast %126 : vector<1x96xf32> to vector<8x96xf32>
    %128 = arith.addf %125, %127 : vector<8x96xf32>
    %129 = vector.extract_strided_slice %128 {offsets = [0, 0], sizes = [8, 32], strides = [1, 1]} : vector<8x96xf32> to vector<8x32xf32>
    %130 = vector.extract_strided_slice %128 {offsets = [0, 32], sizes = [8, 32], strides = [1, 1]} : vector<8x96xf32> to vector<8x32xf32>
    %131 = vector.extract_strided_slice %128 {offsets = [0, 64], sizes = [8, 32], strides = [1, 1]} : vector<8x96xf32> to vector<8x32xf32>
    %132 = arith.truncf %129 : vector<8x32xf32> to vector<8x32xbf16>
    %133 = arith.truncf %130 : vector<8x32xf32> to vector<8x32xbf16>
    %134 = arith.truncf %131 : vector<8x32xf32> to vector<8x32xbf16>
    %135 = vector.extract_strided_slice %132 {offsets = [0, 0], sizes = [8, 8], strides = [1, 1]} : vector<8x32xbf16> to vector<8x8xbf16>
    %136 = vector.extract_strided_slice %133 {offsets = [0, 0], sizes = [8, 8], strides = [1, 1]} : vector<8x32xbf16> to vector<8x8xbf16>
    %cst_40 = arith.constant dense<0.000000e+00> : vector<8x8xf32>
    %137 = tpu.matmul %135, %136, %cst_40 {dimension_numbers = #tpu.dot_dimension_numbers<[1], [1], [0], [0], [0, 0, 1, 0], [], []>} : vector<8x8xbf16>, vector<8x8xbf16>, vector<8x8xf32> -> vector<8x8xf32>
    %cst_41 = arith.constant dense<0xFF800000> : vector<8xf32>
    %138 = vector.multi_reduction <maximumf>, %137, %cst_41 [1] : vector<8x8xf32> to vector<8xf32>
    %139 = vector.shape_cast %138 : vector<8xf32> to vector<8x1xf32>
    %140 = vector.broadcast %139 : vector<8x1xf32> to vector<8x8xf32>
    %141 = arith.subf %137, %140 : vector<8x8xf32>
    %142 = math.exp %141 : vector<8x8xf32>
    %cst_42 = arith.constant dense<0.000000e+00> : vector<8xf32>
    %143 = vector.multi_reduction <add>, %142, %cst_42 [1] : vector<8x8xf32> to vector<8xf32>
    %144 = vector.shape_cast %143 : vector<8xf32> to vector<8x1xf32>
    %145 = tpu.reciprocal %144 {approx = true} : vector<8x1xf32> -> vector<8x1xf32>
    %146 = vector.broadcast %145 : vector<8x1xf32> to vector<8x8xf32>
    %147 = arith.mulf %142, %146 : vector<8x8xf32>
    %148 = arith.truncf %147 : vector<8x8xf32> to vector<8x8xbf16>
    %149 = vector.extract_strided_slice %134 {offsets = [0, 0], sizes = [8, 8], strides = [1, 1]} : vector<8x32xbf16> to vector<8x8xbf16>
    %cst_43 = arith.constant dense<0.000000e+00> : vector<8x8xf32>
    %150 = tpu.matmul %148, %149, %cst_43 {dimension_numbers = #tpu.dot_dimension_numbers<[1], [0], [0], [1], [0, 0, 1, 1], [], []>} : vector<8x8xbf16>, vector<8x8xbf16>, vector<8x8xf32> -> vector<8x8xf32>
    %151 = vector.extract_strided_slice %132 {offsets = [0, 8], sizes = [8, 8], strides = [1, 1]} : vector<8x32xbf16> to vector<8x8xbf16>
    %152 = vector.extract_strided_slice %133 {offsets = [0, 8], sizes = [8, 8], strides = [1, 1]} : vector<8x32xbf16> to vector<8x8xbf16>
    %cst_44 = arith.constant dense<0.000000e+00> : vector<8x8xf32>
    %153 = tpu.matmul %151, %152, %cst_44 {dimension_numbers = #tpu.dot_dimension_numbers<[1], [1], [0], [0], [0, 0, 1, 0], [], []>} : vector<8x8xbf16>, vector<8x8xbf16>, vector<8x8xf32> -> vector<8x8xf32>
    %cst_45 = arith.constant dense<0xFF800000> : vector<8xf32>
    %154 = vector.multi_reduction <maximumf>, %153, %cst_45 [1] : vector<8x8xf32> to vector<8xf32>
    %155 = vector.shape_cast %154 : vector<8xf32> to vector<8x1xf32>
    %156 = vector.broadcast %155 : vector<8x1xf32> to vector<8x8xf32>
    %157 = arith.subf %153, %156 : vector<8x8xf32>
    %158 = math.exp %157 : vector<8x8xf32>
    %cst_46 = arith.constant dense<0.000000e+00> : vector<8xf32>
    %159 = vector.multi_reduction <add>, %158, %cst_46 [1] : vector<8x8xf32> to vector<8xf32>
    %160 = vector.shape_cast %159 : vector<8xf32> to vector<8x1xf32>
    %161 = tpu.reciprocal %160 {approx = true} : vector<8x1xf32> -> vector<8x1xf32>
    %162 = vector.broadcast %161 : vector<8x1xf32> to vector<8x8xf32>
    %163 = arith.mulf %158, %162 : vector<8x8xf32>
    %164 = arith.truncf %163 : vector<8x8xf32> to vector<8x8xbf16>
    %165 = vector.extract_strided_slice %134 {offsets = [0, 8], sizes = [8, 8], strides = [1, 1]} : vector<8x32xbf16> to vector<8x8xbf16>
    %cst_47 = arith.constant dense<0.000000e+00> : vector<8x8xf32>
    %166 = tpu.matmul %164, %165, %cst_47 {dimension_numbers = #tpu.dot_dimension_numbers<[1], [0], [0], [1], [0, 0, 1, 1], [], []>} : vector<8x8xbf16>, vector<8x8xbf16>, vector<8x8xf32> -> vector<8x8xf32>
    %167 = vector.extract_strided_slice %132 {offsets = [0, 16], sizes = [8, 8], strides = [1, 1]} : vector<8x32xbf16> to vector<8x8xbf16>
    %168 = vector.extract_strided_slice %133 {offsets = [0, 16], sizes = [8, 8], strides = [1, 1]} : vector<8x32xbf16> to vector<8x8xbf16>
    %cst_48 = arith.constant dense<0.000000e+00> : vector<8x8xf32>
    %169 = tpu.matmul %167, %168, %cst_48 {dimension_numbers = #tpu.dot_dimension_numbers<[1], [1], [0], [0], [0, 0, 1, 0], [], []>} : vector<8x8xbf16>, vector<8x8xbf16>, vector<8x8xf32> -> vector<8x8xf32>
    %cst_49 = arith.constant dense<0xFF800000> : vector<8xf32>
    %170 = vector.multi_reduction <maximumf>, %169, %cst_49 [1] : vector<8x8xf32> to vector<8xf32>
    %171 = vector.shape_cast %170 : vector<8xf32> to vector<8x1xf32>
    %172 = vector.broadcast %171 : vector<8x1xf32> to vector<8x8xf32>
    %173 = arith.subf %169, %172 : vector<8x8xf32>
    %174 = math.exp %173 : vector<8x8xf32>
    %cst_50 = arith.constant dense<0.000000e+00> : vector<8xf32>
    %175 = vector.multi_reduction <add>, %174, %cst_50 [1] : vector<8x8xf32> to vector<8xf32>
    %176 = vector.shape_cast %175 : vector<8xf32> to vector<8x1xf32>
    %177 = tpu.reciprocal %176 {approx = true} : vector<8x1xf32> -> vector<8x1xf32>
    %178 = vector.broadcast %177 : vector<8x1xf32> to vector<8x8xf32>
    %179 = arith.mulf %174, %178 : vector<8x8xf32>
    %180 = arith.truncf %179 : vector<8x8xf32> to vector<8x8xbf16>
    %181 = vector.extract_strided_slice %134 {offsets = [0, 16], sizes = [8, 8], strides = [1, 1]} : vector<8x32xbf16> to vector<8x8xbf16>
    %cst_51 = arith.constant dense<0.000000e+00> : vector<8x8xf32>
    %182 = tpu.matmul %180, %181, %cst_51 {dimension_numbers = #tpu.dot_dimension_numbers<[1], [0], [0], [1], [0, 0, 1, 1], [], []>} : vector<8x8xbf16>, vector<8x8xbf16>, vector<8x8xf32> -> vector<8x8xf32>
    %183 = vector.extract_strided_slice %132 {offsets = [0, 24], sizes = [8, 8], strides = [1, 1]} : vector<8x32xbf16> to vector<8x8xbf16>
    %184 = vector.extract_strided_slice %133 {offsets = [0, 24], sizes = [8, 8], strides = [1, 1]} : vector<8x32xbf16> to vector<8x8xbf16>
    %cst_52 = arith.constant dense<0.000000e+00> : vector<8x8xf32>
    %185 = tpu.matmul %183, %184, %cst_52 {dimension_numbers = #tpu.dot_dimension_numbers<[1], [1], [0], [0], [0, 0, 1, 0], [], []>} : vector<8x8xbf16>, vector<8x8xbf16>, vector<8x8xf32> -> vector<8x8xf32>
    %cst_53 = arith.constant dense<0xFF800000> : vector<8xf32>
    %186 = vector.multi_reduction <maximumf>, %185, %cst_53 [1] : vector<8x8xf32> to vector<8xf32>
    %187 = vector.shape_cast %186 : vector<8xf32> to vector<8x1xf32>
    %188 = vector.broadcast %187 : vector<8x1xf32> to vector<8x8xf32>
    %189 = arith.subf %185, %188 : vector<8x8xf32>
    %190 = math.exp %189 : vector<8x8xf32>
    %cst_54 = arith.constant dense<0.000000e+00> : vector<8xf32>
    %191 = vector.multi_reduction <add>, %190, %cst_54 [1] : vector<8x8xf32> to vector<8xf32>
    %192 = vector.shape_cast %191 : vector<8xf32> to vector<8x1xf32>
    %193 = tpu.reciprocal %192 {approx = true} : vector<8x1xf32> -> vector<8x1xf32>
    %194 = vector.broadcast %193 : vector<8x1xf32> to vector<8x8xf32>
    %195 = arith.mulf %190, %194 : vector<8x8xf32>
    %196 = arith.truncf %195 : vector<8x8xf32> to vector<8x8xbf16>
    %197 = vector.extract_strided_slice %134 {offsets = [0, 24], sizes = [8, 8], strides = [1, 1]} : vector<8x32xbf16> to vector<8x8xbf16>
    %cst_55 = arith.constant dense<0.000000e+00> : vector<8x8xf32>
    %198 = tpu.matmul %196, %197, %cst_55 {dimension_numbers = #tpu.dot_dimension_numbers<[1], [0], [0], [1], [0, 0, 1, 1], [], []>} : vector<8x8xbf16>, vector<8x8xbf16>, vector<8x8xf32> -> vector<8x8xf32>
    %199 = tpu.concatenate %150, %166, %182, %198 in 1 : vector<8x8xf32>, vector<8x8xf32>, vector<8x8xf32>, vector<8x8xf32> -> vector<8x32xf32>
    %200 = arith.addf %129, %199 : vector<8x32xf32>
    %c0_56 = arith.constant 0 : index
    %c384_57 = arith.constant 384 : index
    %201 = vector.load %arg3[%c0_56, %c384_57] : memref<32x1024xbf16, #tpu.memory_space<vmem>>, vector<32x32xbf16>
    %c0_58 = arith.constant 0 : index
    %c512 = arith.constant 512 : index
    %202 = vector.load %arg4[%c0_58, %c512] : memref<1x1280xf32, #tpu.memory_space<vmem>>, vector<1x32xf32>
    %cst_59 = arith.constant dense<0.000000e+00> : vector<8xf32>
    %203 = vector.multi_reduction <add>, %200, %cst_59 [1] : vector<8x32xf32> to vector<8xf32>
    %204 = vector.shape_cast %203 : vector<8xf32> to vector<8x1xf32>
    %cst_60 = arith.constant 3.200000e+01 : f32
    %205 = vector.broadcast %cst_60 : f32 to vector<8x1xf32>
    %206 = arith.divf %204, %205 : vector<8x1xf32>
    %207 = vector.broadcast %206 : vector<8x1xf32> to vector<8x32xf32>
    %208 = arith.subf %200, %207 : vector<8x32xf32>
    %209 = arith.mulf %208, %208 : vector<8x32xf32>
    %cst_61 = arith.constant dense<0.000000e+00> : vector<8xf32>
    %210 = vector.multi_reduction <add>, %209, %cst_61 [1] : vector<8x32xf32> to vector<8xf32>
    %211 = vector.shape_cast %210 : vector<8xf32> to vector<8x1xf32>
    %cst_62 = arith.constant 3.200000e+01 : f32
    %212 = vector.broadcast %cst_62 : f32 to vector<8x1xf32>
    %213 = arith.divf %211, %212 : vector<8x1xf32>
    %cst_63 = arith.constant 9.99999974E-6 : f32
    %214 = vector.broadcast %cst_63 : f32 to vector<8x1xf32>
    %215 = arith.addf %213, %214 : vector<8x1xf32>
    %216 = math.rsqrt %215 : vector<8x1xf32>
    %217 = vector.broadcast %216 : vector<8x1xf32> to vector<8x32xf32>
    %218 = arith.mulf %208, %217 : vector<8x32xf32>
    %219 = arith.truncf %218 : vector<8x32xf32> to vector<8x32xbf16>
    %cst_64 = arith.constant dense<0.000000e+00> : vector<8x32xf32>
    %220 = tpu.matmul %219, %201, %cst_64 {dimension_numbers = #tpu.dot_dimension_numbers<[1], [0], [0], [1], [0, 0, 1, 1], [], []>} : vector<8x32xbf16>, vector<32x32xbf16>, vector<8x32xf32> -> vector<8x32xf32>
    %221 = vector.broadcast %202 : vector<1x32xf32> to vector<8x32xf32>
    %222 = arith.addf %220, %221 : vector<8x32xf32>
    %223 = arith.negf %222 : vector<8x32xf32>
    %224 = math.exp %223 : vector<8x32xf32>
    %cst_65 = arith.constant 1.000000e+00 : f32
    %225 = vector.broadcast %cst_65 : f32 to vector<8x32xf32>
    %226 = arith.addf %225, %224 : vector<8x32xf32>
    %227 = arith.divf %225, %226 : vector<8x32xf32>
    %228 = arith.addf %218, %227 : vector<8x32xf32>
    %cst_66 = arith.constant dense<0.000000e+00> : vector<8xf32>
    %229 = vector.multi_reduction <add>, %228, %cst_66 [1] : vector<8x32xf32> to vector<8xf32>
    %230 = vector.shape_cast %229 : vector<8xf32> to vector<8x1xf32>
    %cst_67 = arith.constant 3.200000e+01 : f32
    %231 = vector.broadcast %cst_67 : f32 to vector<8x1xf32>
    %232 = arith.divf %230, %231 : vector<8x1xf32>
    %233 = vector.broadcast %232 : vector<8x1xf32> to vector<8x32xf32>
    %234 = arith.subf %228, %233 : vector<8x32xf32>
    %235 = arith.mulf %234, %234 : vector<8x32xf32>
    %cst_68 = arith.constant dense<0.000000e+00> : vector<8xf32>
    %236 = vector.multi_reduction <add>, %235, %cst_68 [1] : vector<8x32xf32> to vector<8xf32>
    %237 = vector.shape_cast %236 : vector<8xf32> to vector<8x1xf32>
    %cst_69 = arith.constant 3.200000e+01 : f32
    %238 = vector.broadcast %cst_69 : f32 to vector<8x1xf32>
    %239 = arith.divf %237, %238 : vector<8x1xf32>
    %cst_70 = arith.constant 9.99999974E-6 : f32
    %240 = vector.broadcast %cst_70 : f32 to vector<8x1xf32>
    %241 = arith.addf %239, %240 : vector<8x1xf32>
    %242 = math.rsqrt %241 : vector<8x1xf32>
    %243 = vector.broadcast %242 : vector<8x1xf32> to vector<8x32xf32>
    %244 = arith.mulf %234, %243 : vector<8x32xf32>
    %245 = arith.truncf %244 : vector<8x32xf32> to vector<8x32xbf16>
    %c0_71 = arith.constant 0 : index
    %c128_72 = arith.constant 128 : index
    %246 = vector.load %arg3[%c0_71, %c128_72] : memref<32x1024xbf16, #tpu.memory_space<vmem>>, vector<32x96xbf16>
    %cst_73 = arith.constant dense<0.000000e+00> : vector<8x96xf32>
    %247 = tpu.matmul %245, %246, %cst_73 {dimension_numbers = #tpu.dot_dimension_numbers<[1], [0], [0], [1], [0, 0, 1, 1], [], []>} : vector<8x32xbf16>, vector<32x96xbf16>, vector<8x96xf32> -> vector<8x96xf32>
    %c0_74 = arith.constant 0 : index
    %c256_75 = arith.constant 256 : index
    %248 = vector.load %arg4[%c0_74, %c256_75] : memref<1x1280xf32, #tpu.memory_space<vmem>>, vector<1x96xf32>
    %249 = vector.broadcast %248 : vector<1x96xf32> to vector<8x96xf32>
    %250 = arith.addf %247, %249 : vector<8x96xf32>
    %251 = vector.extract_strided_slice %250 {offsets = [0, 0], sizes = [8, 32], strides = [1, 1]} : vector<8x96xf32> to vector<8x32xf32>
    %252 = vector.extract_strided_slice %250 {offsets = [0, 32], sizes = [8, 32], strides = [1, 1]} : vector<8x96xf32> to vector<8x32xf32>
    %253 = vector.extract_strided_slice %250 {offsets = [0, 64], sizes = [8, 32], strides = [1, 1]} : vector<8x96xf32> to vector<8x32xf32>
    %254 = arith.truncf %251 : vector<8x32xf32> to vector<8x32xbf16>
    %255 = arith.truncf %252 : vector<8x32xf32> to vector<8x32xbf16>
    %256 = arith.truncf %253 : vector<8x32xf32> to vector<8x32xbf16>
    %257 = vector.extract_strided_slice %254 {offsets = [0, 0], sizes = [8, 8], strides = [1, 1]} : vector<8x32xbf16> to vector<8x8xbf16>
    %258 = vector.extract_strided_slice %255 {offsets = [0, 0], sizes = [8, 8], strides = [1, 1]} : vector<8x32xbf16> to vector<8x8xbf16>
    %cst_76 = arith.constant dense<0.000000e+00> : vector<8x8xf32>
    %259 = tpu.matmul %257, %258, %cst_76 {dimension_numbers = #tpu.dot_dimension_numbers<[1], [1], [0], [0], [0, 0, 1, 0], [], []>} : vector<8x8xbf16>, vector<8x8xbf16>, vector<8x8xf32> -> vector<8x8xf32>
    %cst_77 = arith.constant dense<0xFF800000> : vector<8xf32>
    %260 = vector.multi_reduction <maximumf>, %259, %cst_77 [1] : vector<8x8xf32> to vector<8xf32>
    %261 = vector.shape_cast %260 : vector<8xf32> to vector<8x1xf32>
    %262 = vector.broadcast %261 : vector<8x1xf32> to vector<8x8xf32>
    %263 = arith.subf %259, %262 : vector<8x8xf32>
    %264 = math.exp %263 : vector<8x8xf32>
    %cst_78 = arith.constant dense<0.000000e+00> : vector<8xf32>
    %265 = vector.multi_reduction <add>, %264, %cst_78 [1] : vector<8x8xf32> to vector<8xf32>
    %266 = vector.shape_cast %265 : vector<8xf32> to vector<8x1xf32>
    %267 = tpu.reciprocal %266 {approx = true} : vector<8x1xf32> -> vector<8x1xf32>
    %268 = vector.broadcast %267 : vector<8x1xf32> to vector<8x8xf32>
    %269 = arith.mulf %264, %268 : vector<8x8xf32>
    %270 = arith.truncf %269 : vector<8x8xf32> to vector<8x8xbf16>
    %271 = vector.extract_strided_slice %256 {offsets = [0, 0], sizes = [8, 8], strides = [1, 1]} : vector<8x32xbf16> to vector<8x8xbf16>
    %cst_79 = arith.constant dense<0.000000e+00> : vector<8x8xf32>
    %272 = tpu.matmul %270, %271, %cst_79 {dimension_numbers = #tpu.dot_dimension_numbers<[1], [0], [0], [1], [0, 0, 1, 1], [], []>} : vector<8x8xbf16>, vector<8x8xbf16>, vector<8x8xf32> -> vector<8x8xf32>
    %273 = vector.extract_strided_slice %254 {offsets = [0, 8], sizes = [8, 8], strides = [1, 1]} : vector<8x32xbf16> to vector<8x8xbf16>
    %274 = vector.extract_strided_slice %255 {offsets = [0, 8], sizes = [8, 8], strides = [1, 1]} : vector<8x32xbf16> to vector<8x8xbf16>
    %cst_80 = arith.constant dense<0.000000e+00> : vector<8x8xf32>
    %275 = tpu.matmul %273, %274, %cst_80 {dimension_numbers = #tpu.dot_dimension_numbers<[1], [1], [0], [0], [0, 0, 1, 0], [], []>} : vector<8x8xbf16>, vector<8x8xbf16>, vector<8x8xf32> -> vector<8x8xf32>
    %cst_81 = arith.constant dense<0xFF800000> : vector<8xf32>
    %276 = vector.multi_reduction <maximumf>, %275, %cst_81 [1] : vector<8x8xf32> to vector<8xf32>
    %277 = vector.shape_cast %276 : vector<8xf32> to vector<8x1xf32>
    %278 = vector.broadcast %277 : vector<8x1xf32> to vector<8x8xf32>
    %279 = arith.subf %275, %278 : vector<8x8xf32>
    %280 = math.exp %279 : vector<8x8xf32>
    %cst_82 = arith.constant dense<0.000000e+00> : vector<8xf32>
    %281 = vector.multi_reduction <add>, %280, %cst_82 [1] : vector<8x8xf32> to vector<8xf32>
    %282 = vector.shape_cast %281 : vector<8xf32> to vector<8x1xf32>
    %283 = tpu.reciprocal %282 {approx = true} : vector<8x1xf32> -> vector<8x1xf32>
    %284 = vector.broadcast %283 : vector<8x1xf32> to vector<8x8xf32>
    %285 = arith.mulf %280, %284 : vector<8x8xf32>
    %286 = arith.truncf %285 : vector<8x8xf32> to vector<8x8xbf16>
    %287 = vector.extract_strided_slice %256 {offsets = [0, 8], sizes = [8, 8], strides = [1, 1]} : vector<8x32xbf16> to vector<8x8xbf16>
    %cst_83 = arith.constant dense<0.000000e+00> : vector<8x8xf32>
    %288 = tpu.matmul %286, %287, %cst_83 {dimension_numbers = #tpu.dot_dimension_numbers<[1], [0], [0], [1], [0, 0, 1, 1], [], []>} : vector<8x8xbf16>, vector<8x8xbf16>, vector<8x8xf32> -> vector<8x8xf32>
    %289 = vector.extract_strided_slice %254 {offsets = [0, 16], sizes = [8, 8], strides = [1, 1]} : vector<8x32xbf16> to vector<8x8xbf16>
    %290 = vector.extract_strided_slice %255 {offsets = [0, 16], sizes = [8, 8], strides = [1, 1]} : vector<8x32xbf16> to vector<8x8xbf16>
    %cst_84 = arith.constant dense<0.000000e+00> : vector<8x8xf32>
    %291 = tpu.matmul %289, %290, %cst_84 {dimension_numbers = #tpu.dot_dimension_numbers<[1], [1], [0], [0], [0, 0, 1, 0], [], []>} : vector<8x8xbf16>, vector<8x8xbf16>, vector<8x8xf32> -> vector<8x8xf32>
    %cst_85 = arith.constant dense<0xFF800000> : vector<8xf32>
    %292 = vector.multi_reduction <maximumf>, %291, %cst_85 [1] : vector<8x8xf32> to vector<8xf32>
    %293 = vector.shape_cast %292 : vector<8xf32> to vector<8x1xf32>
    %294 = vector.broadcast %293 : vector<8x1xf32> to vector<8x8xf32>
    %295 = arith.subf %291, %294 : vector<8x8xf32>
    %296 = math.exp %295 : vector<8x8xf32>
    %cst_86 = arith.constant dense<0.000000e+00> : vector<8xf32>
    %297 = vector.multi_reduction <add>, %296, %cst_86 [1] : vector<8x8xf32> to vector<8xf32>
    %298 = vector.shape_cast %297 : vector<8xf32> to vector<8x1xf32>
    %299 = tpu.reciprocal %298 {approx = true} : vector<8x1xf32> -> vector<8x1xf32>
    %300 = vector.broadcast %299 : vector<8x1xf32> to vector<8x8xf32>
    %301 = arith.mulf %296, %300 : vector<8x8xf32>
    %302 = arith.truncf %301 : vector<8x8xf32> to vector<8x8xbf16>
    %303 = vector.extract_strided_slice %256 {offsets = [0, 16], sizes = [8, 8], strides = [1, 1]} : vector<8x32xbf16> to vector<8x8xbf16>
    %cst_87 = arith.constant dense<0.000000e+00> : vector<8x8xf32>
    %304 = tpu.matmul %302, %303, %cst_87 {dimension_numbers = #tpu.dot_dimension_numbers<[1], [0], [0], [1], [0, 0, 1, 1], [], []>} : vector<8x8xbf16>, vector<8x8xbf16>, vector<8x8xf32> -> vector<8x8xf32>
    %305 = vector.extract_strided_slice %254 {offsets = [0, 24], sizes = [8, 8], strides = [1, 1]} : vector<8x32xbf16> to vector<8x8xbf16>
    %306 = vector.extract_strided_slice %255 {offsets = [0, 24], sizes = [8, 8], strides = [1, 1]} : vector<8x32xbf16> to vector<8x8xbf16>
    %cst_88 = arith.constant dense<0.000000e+00> : vector<8x8xf32>
    %307 = tpu.matmul %305, %306, %cst_88 {dimension_numbers = #tpu.dot_dimension_numbers<[1], [1], [0], [0], [0, 0, 1, 0], [], []>} : vector<8x8xbf16>, vector<8x8xbf16>, vector<8x8xf32> -> vector<8x8xf32>
    %cst_89 = arith.constant dense<0xFF800000> : vector<8xf32>
    %308 = vector.multi_reduction <maximumf>, %307, %cst_89 [1] : vector<8x8xf32> to vector<8xf32>
    %309 = vector.shape_cast %308 : vector<8xf32> to vector<8x1xf32>
    %310 = vector.broadcast %309 : vector<8x1xf32> to vector<8x8xf32>
    %311 = arith.subf %307, %310 : vector<8x8xf32>
    %312 = math.exp %311 : vector<8x8xf32>
    %cst_90 = arith.constant dense<0.000000e+00> : vector<8xf32>
    %313 = vector.multi_reduction <add>, %312, %cst_90 [1] : vector<8x8xf32> to vector<8xf32>
    %314 = vector.shape_cast %313 : vector<8xf32> to vector<8x1xf32>
    %315 = tpu.reciprocal %314 {approx = true} : vector<8x1xf32> -> vector<8x1xf32>
    %316 = vector.broadcast %315 : vector<8x1xf32> to vector<8x8xf32>
    %317 = arith.mulf %312, %316 : vector<8x8xf32>
    %318 = arith.truncf %317 : vector<8x8xf32> to vector<8x8xbf16>
    %319 = vector.extract_strided_slice %256 {offsets = [0, 24], sizes = [8, 8], strides = [1, 1]} : vector<8x32xbf16> to vector<8x8xbf16>
    %cst_91 = arith.constant dense<0.000000e+00> : vector<8x8xf32>
    %320 = tpu.matmul %318, %319, %cst_91 {dimension_numbers = #tpu.dot_dimension_numbers<[1], [0], [0], [1], [0, 0, 1, 1], [], []>} : vector<8x8xbf16>, vector<8x8xbf16>, vector<8x8xf32> -> vector<8x8xf32>
    %321 = tpu.concatenate %272, %288, %304, %320 in 1 : vector<8x8xf32>, vector<8x8xf32>, vector<8x8xf32>, vector<8x8xf32> -> vector<8x32xf32>
    %322 = arith.addf %251, %321 : vector<8x32xf32>
    %c0_92 = arith.constant 0 : index
    %c512_93 = arith.constant 512 : index
    %323 = vector.load %arg3[%c0_92, %c512_93] : memref<32x1024xbf16, #tpu.memory_space<vmem>>, vector<32x32xbf16>
    %c0_94 = arith.constant 0 : index
    %c640 = arith.constant 640 : index
    %324 = vector.load %arg4[%c0_94, %c640] : memref<1x1280xf32, #tpu.memory_space<vmem>>, vector<1x32xf32>
    %cst_95 = arith.constant dense<0.000000e+00> : vector<8xf32>
    %325 = vector.multi_reduction <add>, %322, %cst_95 [1] : vector<8x32xf32> to vector<8xf32>
    %326 = vector.shape_cast %325 : vector<8xf32> to vector<8x1xf32>
    %cst_96 = arith.constant 3.200000e+01 : f32
    %327 = vector.broadcast %cst_96 : f32 to vector<8x1xf32>
    %328 = arith.divf %326, %327 : vector<8x1xf32>
    %329 = vector.broadcast %328 : vector<8x1xf32> to vector<8x32xf32>
    %330 = arith.subf %322, %329 : vector<8x32xf32>
    %331 = arith.mulf %330, %330 : vector<8x32xf32>
    %cst_97 = arith.constant dense<0.000000e+00> : vector<8xf32>
    %332 = vector.multi_reduction <add>, %331, %cst_97 [1] : vector<8x32xf32> to vector<8xf32>
    %333 = vector.shape_cast %332 : vector<8xf32> to vector<8x1xf32>
    %cst_98 = arith.constant 3.200000e+01 : f32
    %334 = vector.broadcast %cst_98 : f32 to vector<8x1xf32>
    %335 = arith.divf %333, %334 : vector<8x1xf32>
    %cst_99 = arith.constant 9.99999974E-6 : f32
    %336 = vector.broadcast %cst_99 : f32 to vector<8x1xf32>
    %337 = arith.addf %335, %336 : vector<8x1xf32>
    %338 = math.rsqrt %337 : vector<8x1xf32>
    %339 = vector.broadcast %338 : vector<8x1xf32> to vector<8x32xf32>
    %340 = arith.mulf %330, %339 : vector<8x32xf32>
    %341 = arith.truncf %340 : vector<8x32xf32> to vector<8x32xbf16>
    %cst_100 = arith.constant dense<0.000000e+00> : vector<8x32xf32>
    %342 = tpu.matmul %341, %323, %cst_100 {dimension_numbers = #tpu.dot_dimension_numbers<[1], [0], [0], [1], [0, 0, 1, 1], [], []>} : vector<8x32xbf16>, vector<32x32xbf16>, vector<8x32xf32> -> vector<8x32xf32>
    %343 = vector.broadcast %324 : vector<1x32xf32> to vector<8x32xf32>
    %344 = arith.addf %342, %343 : vector<8x32xf32>
    %345 = arith.negf %344 : vector<8x32xf32>
    %346 = math.exp %345 : vector<8x32xf32>
    %cst_101 = arith.constant 1.000000e+00 : f32
    %347 = vector.broadcast %cst_101 : f32 to vector<8x32xf32>
    %348 = arith.addf %347, %346 : vector<8x32xf32>
    %349 = arith.divf %347, %348 : vector<8x32xf32>
    %350 = arith.addf %340, %349 : vector<8x32xf32>
    %cst_102 = arith.constant dense<0.000000e+00> : vector<8xf32>
    %351 = vector.multi_reduction <add>, %350, %cst_102 [1] : vector<8x32xf32> to vector<8xf32>
    %352 = vector.shape_cast %351 : vector<8xf32> to vector<8x1xf32>
    %cst_103 = arith.constant 3.200000e+01 : f32
    %353 = vector.broadcast %cst_103 : f32 to vector<8x1xf32>
    %354 = arith.divf %352, %353 : vector<8x1xf32>
    %355 = vector.broadcast %354 : vector<8x1xf32> to vector<8x32xf32>
    %356 = arith.subf %350, %355 : vector<8x32xf32>
    %357 = arith.mulf %356, %356 : vector<8x32xf32>
    %cst_104 = arith.constant dense<0.000000e+00> : vector<8xf32>
    %358 = vector.multi_reduction <add>, %357, %cst_104 [1] : vector<8x32xf32> to vector<8xf32>
    %359 = vector.shape_cast %358 : vector<8xf32> to vector<8x1xf32>
    %cst_105 = arith.constant 3.200000e+01 : f32
    %360 = vector.broadcast %cst_105 : f32 to vector<8x1xf32>
    %361 = arith.divf %359, %360 : vector<8x1xf32>
    %cst_106 = arith.constant 9.99999974E-6 : f32
    %362 = vector.broadcast %cst_106 : f32 to vector<8x1xf32>
    %363 = arith.addf %361, %362 : vector<8x1xf32>
    %364 = math.rsqrt %363 : vector<8x1xf32>
    %365 = vector.broadcast %364 : vector<8x1xf32> to vector<8x32xf32>
    %366 = arith.mulf %356, %365 : vector<8x32xf32>
    %367 = arith.negf %366 : vector<8x32xf32>
    %368 = math.exp %367 : vector<8x32xf32>
    %cst_107 = arith.constant 1.000000e+00 : f32
    %369 = vector.broadcast %cst_107 : f32 to vector<8x32xf32>
    %370 = arith.addf %369, %368 : vector<8x32xf32>
    %371 = arith.divf %369, %370 : vector<8x32xf32>
    %372 = arith.truncf %371 : vector<8x32xf32> to vector<8x32xbf16>
    %c0_108 = arith.constant 0 : index
    %c640_109 = arith.constant 640 : index
    %373 = vector.load %arg3[%c0_108, %c640_109] : memref<32x1024xbf16, #tpu.memory_space<vmem>>, vector<32x64xbf16>
    %cst_110 = arith.constant dense<0.000000e+00> : vector<8x64xf32>
    %374 = tpu.matmul %372, %373, %cst_110 {dimension_numbers = #tpu.dot_dimension_numbers<[1], [0], [0], [1], [0, 0, 1, 1], [], []>} : vector<8x32xbf16>, vector<32x64xbf16>, vector<8x64xf32> -> vector<8x64xf32>
    %c0_111 = arith.constant 0 : index
    %c896 = arith.constant 896 : index
    %375 = vector.load %arg4[%c0_111, %c896] : memref<1x1280xf32, #tpu.memory_space<vmem>>, vector<1x64xf32>
    %376 = vector.broadcast %375 : vector<1x64xf32> to vector<8x64xf32>
    %377 = arith.addf %374, %376 : vector<8x64xf32>
    %c0_112 = arith.constant 0 : index
    %c768 = arith.constant 768 : index
    %378 = vector.load %arg4[%c0_112, %c768] : memref<1x1280xf32, #tpu.memory_space<vmem>>, vector<1x32xf32>
    %379 = vector.extract_strided_slice %377 {offsets = [0, 0], sizes = [8, 32], strides = [1, 1]} : vector<8x64xf32> to vector<8x32xf32>
    %380 = vector.extract_strided_slice %377 {offsets = [0, 32], sizes = [8, 32], strides = [1, 1]} : vector<8x64xf32> to vector<8x32xf32>
    %381 = arith.truncf %378 : vector<1x32xf32> to vector<1x32xbf16>
    %382 = arith.truncf %379 : vector<8x32xf32> to vector<8x32xbf16>
    %383 = arith.truncf %380 : vector<8x32xf32> to vector<8x32xbf16>
    %384 = vector.extract_strided_slice %381 {offsets = [0, 0], sizes = [1, 8], strides = [1, 1]} : vector<1x32xbf16> to vector<1x8xbf16>
    %385 = vector.extract_strided_slice %382 {offsets = [0, 0], sizes = [8, 8], strides = [1, 1]} : vector<8x32xbf16> to vector<8x8xbf16>
    %cst_113 = arith.constant dense<0.000000e+00> : vector<1x8xf32>
    %386 = tpu.matmul %384, %385, %cst_113 {dimension_numbers = #tpu.dot_dimension_numbers<[1], [1], [0], [0], [0, 0, 1, 0], [], []>} : vector<1x8xbf16>, vector<8x8xbf16>, vector<1x8xf32> -> vector<1x8xf32>
    %cst_114 = arith.constant dense<0xFF800000> : vector<1xf32>
    %387 = vector.multi_reduction <maximumf>, %386, %cst_114 [1] : vector<1x8xf32> to vector<1xf32>
    %388 = vector.shape_cast %387 : vector<1xf32> to vector<1x1xf32>
    %389 = vector.broadcast %388 : vector<1x1xf32> to vector<1x8xf32>
    %390 = arith.subf %386, %389 : vector<1x8xf32>
    %391 = math.exp %390 : vector<1x8xf32>
    %cst_115 = arith.constant dense<0.000000e+00> : vector<1xf32>
    %392 = vector.multi_reduction <add>, %391, %cst_115 [1] : vector<1x8xf32> to vector<1xf32>
    %393 = vector.shape_cast %392 : vector<1xf32> to vector<1x1xf32>
    %394 = tpu.reciprocal %393 {approx = true} : vector<1x1xf32> -> vector<1x1xf32>
    %395 = vector.broadcast %394 : vector<1x1xf32> to vector<1x8xf32>
    %396 = arith.mulf %391, %395 : vector<1x8xf32>
    %397 = arith.truncf %396 : vector<1x8xf32> to vector<1x8xbf16>
    %398 = vector.extract_strided_slice %383 {offsets = [0, 0], sizes = [8, 8], strides = [1, 1]} : vector<8x32xbf16> to vector<8x8xbf16>
    %cst_116 = arith.constant dense<0.000000e+00> : vector<1x8xf32>
    %399 = tpu.matmul %397, %398, %cst_116 {dimension_numbers = #tpu.dot_dimension_numbers<[1], [0], [0], [1], [0, 0, 1, 1], [], []>} : vector<1x8xbf16>, vector<8x8xbf16>, vector<1x8xf32> -> vector<1x8xf32>
    %400 = vector.extract_strided_slice %381 {offsets = [0, 8], sizes = [1, 8], strides = [1, 1]} : vector<1x32xbf16> to vector<1x8xbf16>
    %401 = vector.extract_strided_slice %382 {offsets = [0, 8], sizes = [8, 8], strides = [1, 1]} : vector<8x32xbf16> to vector<8x8xbf16>
    %cst_117 = arith.constant dense<0.000000e+00> : vector<1x8xf32>
    %402 = tpu.matmul %400, %401, %cst_117 {dimension_numbers = #tpu.dot_dimension_numbers<[1], [1], [0], [0], [0, 0, 1, 0], [], []>} : vector<1x8xbf16>, vector<8x8xbf16>, vector<1x8xf32> -> vector<1x8xf32>
    %cst_118 = arith.constant dense<0xFF800000> : vector<1xf32>
    %403 = vector.multi_reduction <maximumf>, %402, %cst_118 [1] : vector<1x8xf32> to vector<1xf32>
    %404 = vector.shape_cast %403 : vector<1xf32> to vector<1x1xf32>
    %405 = vector.broadcast %404 : vector<1x1xf32> to vector<1x8xf32>
    %406 = arith.subf %402, %405 : vector<1x8xf32>
    %407 = math.exp %406 : vector<1x8xf32>
    %cst_119 = arith.constant dense<0.000000e+00> : vector<1xf32>
    %408 = vector.multi_reduction <add>, %407, %cst_119 [1] : vector<1x8xf32> to vector<1xf32>
    %409 = vector.shape_cast %408 : vector<1xf32> to vector<1x1xf32>
    %410 = tpu.reciprocal %409 {approx = true} : vector<1x1xf32> -> vector<1x1xf32>
    %411 = vector.broadcast %410 : vector<1x1xf32> to vector<1x8xf32>
    %412 = arith.mulf %407, %411 : vector<1x8xf32>
    %413 = arith.truncf %412 : vector<1x8xf32> to vector<1x8xbf16>
    %414 = vector.extract_strided_slice %383 {offsets = [0, 8], sizes = [8, 8], strides = [1, 1]} : vector<8x32xbf16> to vector<8x8xbf16>
    %cst_120 = arith.constant dense<0.000000e+00> : vector<1x8xf32>
    %415 = tpu.matmul %413, %414, %cst_120 {dimension_numbers = #tpu.dot_dimension_numbers<[1], [0], [0], [1], [0, 0, 1, 1], [], []>} : vector<1x8xbf16>, vector<8x8xbf16>, vector<1x8xf32> -> vector<1x8xf32>
    %416 = vector.extract_strided_slice %381 {offsets = [0, 16], sizes = [1, 8], strides = [1, 1]} : vector<1x32xbf16> to vector<1x8xbf16>
    %417 = vector.extract_strided_slice %382 {offsets = [0, 16], sizes = [8, 8], strides = [1, 1]} : vector<8x32xbf16> to vector<8x8xbf16>
    %cst_121 = arith.constant dense<0.000000e+00> : vector<1x8xf32>
    %418 = tpu.matmul %416, %417, %cst_121 {dimension_numbers = #tpu.dot_dimension_numbers<[1], [1], [0], [0], [0, 0, 1, 0], [], []>} : vector<1x8xbf16>, vector<8x8xbf16>, vector<1x8xf32> -> vector<1x8xf32>
    %cst_122 = arith.constant dense<0xFF800000> : vector<1xf32>
    %419 = vector.multi_reduction <maximumf>, %418, %cst_122 [1] : vector<1x8xf32> to vector<1xf32>
    %420 = vector.shape_cast %419 : vector<1xf32> to vector<1x1xf32>
    %421 = vector.broadcast %420 : vector<1x1xf32> to vector<1x8xf32>
    %422 = arith.subf %418, %421 : vector<1x8xf32>
    %423 = math.exp %422 : vector<1x8xf32>
    %cst_123 = arith.constant dense<0.000000e+00> : vector<1xf32>
    %424 = vector.multi_reduction <add>, %423, %cst_123 [1] : vector<1x8xf32> to vector<1xf32>
    %425 = vector.shape_cast %424 : vector<1xf32> to vector<1x1xf32>
    %426 = tpu.reciprocal %425 {approx = true} : vector<1x1xf32> -> vector<1x1xf32>
    %427 = vector.broadcast %426 : vector<1x1xf32> to vector<1x8xf32>
    %428 = arith.mulf %423, %427 : vector<1x8xf32>
    %429 = arith.truncf %428 : vector<1x8xf32> to vector<1x8xbf16>
    %430 = vector.extract_strided_slice %383 {offsets = [0, 16], sizes = [8, 8], strides = [1, 1]} : vector<8x32xbf16> to vector<8x8xbf16>
    %cst_124 = arith.constant dense<0.000000e+00> : vector<1x8xf32>
    %431 = tpu.matmul %429, %430, %cst_124 {dimension_numbers = #tpu.dot_dimension_numbers<[1], [0], [0], [1], [0, 0, 1, 1], [], []>} : vector<1x8xbf16>, vector<8x8xbf16>, vector<1x8xf32> -> vector<1x8xf32>
    %432 = vector.extract_strided_slice %381 {offsets = [0, 24], sizes = [1, 8], strides = [1, 1]} : vector<1x32xbf16> to vector<1x8xbf16>
    %433 = vector.extract_strided_slice %382 {offsets = [0, 24], sizes = [8, 8], strides = [1, 1]} : vector<8x32xbf16> to vector<8x8xbf16>
    %cst_125 = arith.constant dense<0.000000e+00> : vector<1x8xf32>
    %434 = tpu.matmul %432, %433, %cst_125 {dimension_numbers = #tpu.dot_dimension_numbers<[1], [1], [0], [0], [0, 0, 1, 0], [], []>} : vector<1x8xbf16>, vector<8x8xbf16>, vector<1x8xf32> -> vector<1x8xf32>
    %cst_126 = arith.constant dense<0xFF800000> : vector<1xf32>
    %435 = vector.multi_reduction <maximumf>, %434, %cst_126 [1] : vector<1x8xf32> to vector<1xf32>
    %436 = vector.shape_cast %435 : vector<1xf32> to vector<1x1xf32>
    %437 = vector.broadcast %436 : vector<1x1xf32> to vector<1x8xf32>
    %438 = arith.subf %434, %437 : vector<1x8xf32>
    %439 = math.exp %438 : vector<1x8xf32>
    %cst_127 = arith.constant dense<0.000000e+00> : vector<1xf32>
    %440 = vector.multi_reduction <add>, %439, %cst_127 [1] : vector<1x8xf32> to vector<1xf32>
    %441 = vector.shape_cast %440 : vector<1xf32> to vector<1x1xf32>
    %442 = tpu.reciprocal %441 {approx = true} : vector<1x1xf32> -> vector<1x1xf32>
    %443 = vector.broadcast %442 : vector<1x1xf32> to vector<1x8xf32>
    %444 = arith.mulf %439, %443 : vector<1x8xf32>
    %445 = arith.truncf %444 : vector<1x8xf32> to vector<1x8xbf16>
    %446 = vector.extract_strided_slice %383 {offsets = [0, 24], sizes = [8, 8], strides = [1, 1]} : vector<8x32xbf16> to vector<8x8xbf16>
    %cst_128 = arith.constant dense<0.000000e+00> : vector<1x8xf32>
    %447 = tpu.matmul %445, %446, %cst_128 {dimension_numbers = #tpu.dot_dimension_numbers<[1], [0], [0], [1], [0, 0, 1, 1], [], []>} : vector<1x8xbf16>, vector<8x8xbf16>, vector<1x8xf32> -> vector<1x8xf32>
    %448 = tpu.concatenate %399, %415, %431, %447 in 1 : vector<1x8xf32>, vector<1x8xf32>, vector<1x8xf32>, vector<1x8xf32> -> vector<1x32xf32>
    %449 = arith.addf %378, %448 : vector<1x32xf32>
    %c0_129 = arith.constant 0 : index
    %c768_130 = arith.constant 768 : index
    %450 = vector.load %arg3[%c0_129, %c768_130] : memref<32x1024xbf16, #tpu.memory_space<vmem>>, vector<32x32xbf16>
    %c0_131 = arith.constant 0 : index
    %c1024 = arith.constant 1024 : index
    %451 = vector.load %arg4[%c0_131, %c1024] : memref<1x1280xf32, #tpu.memory_space<vmem>>, vector<1x32xf32>
    %cst_132 = arith.constant dense<0.000000e+00> : vector<1xf32>
    %452 = vector.multi_reduction <add>, %449, %cst_132 [1] : vector<1x32xf32> to vector<1xf32>
    %453 = vector.shape_cast %452 : vector<1xf32> to vector<1x1xf32>
    %cst_133 = arith.constant 3.200000e+01 : f32
    %454 = vector.broadcast %cst_133 : f32 to vector<1x1xf32>
    %455 = arith.divf %453, %454 : vector<1x1xf32>
    %456 = vector.broadcast %455 : vector<1x1xf32> to vector<1x32xf32>
    %457 = arith.subf %449, %456 : vector<1x32xf32>
    %458 = arith.mulf %457, %457 : vector<1x32xf32>
    %cst_134 = arith.constant dense<0.000000e+00> : vector<1xf32>
    %459 = vector.multi_reduction <add>, %458, %cst_134 [1] : vector<1x32xf32> to vector<1xf32>
    %460 = vector.shape_cast %459 : vector<1xf32> to vector<1x1xf32>
    %cst_135 = arith.constant 3.200000e+01 : f32
    %461 = vector.broadcast %cst_135 : f32 to vector<1x1xf32>
    %462 = arith.divf %460, %461 : vector<1x1xf32>
    %cst_136 = arith.constant 9.99999974E-6 : f32
    %463 = vector.broadcast %cst_136 : f32 to vector<1x1xf32>
    %464 = arith.addf %462, %463 : vector<1x1xf32>
    %465 = math.rsqrt %464 : vector<1x1xf32>
    %466 = vector.broadcast %465 : vector<1x1xf32> to vector<1x32xf32>
    %467 = arith.mulf %457, %466 : vector<1x32xf32>
    %468 = arith.truncf %467 : vector<1x32xf32> to vector<1x32xbf16>
    %cst_137 = arith.constant dense<0.000000e+00> : vector<1x32xf32>
    %469 = tpu.matmul %468, %450, %cst_137 {dimension_numbers = #tpu.dot_dimension_numbers<[1], [0], [0], [1], [0, 0, 1, 1], [], []>} : vector<1x32xbf16>, vector<32x32xbf16>, vector<1x32xf32> -> vector<1x32xf32>
    %470 = arith.addf %469, %451 : vector<1x32xf32>
    %471 = arith.negf %470 : vector<1x32xf32>
    %472 = math.exp %471 : vector<1x32xf32>
    %cst_138 = arith.constant 1.000000e+00 : f32
    %473 = vector.broadcast %cst_138 : f32 to vector<1x32xf32>
    %474 = arith.addf %473, %472 : vector<1x32xf32>
    %475 = arith.divf %473, %474 : vector<1x32xf32>
    %476 = arith.addf %467, %475 : vector<1x32xf32>
    %cst_139 = arith.constant dense<0.000000e+00> : vector<1xf32>
    %477 = vector.multi_reduction <add>, %476, %cst_139 [1] : vector<1x32xf32> to vector<1xf32>
    %478 = vector.shape_cast %477 : vector<1xf32> to vector<1x1xf32>
    %cst_140 = arith.constant 3.200000e+01 : f32
    %479 = vector.broadcast %cst_140 : f32 to vector<1x1xf32>
    %480 = arith.divf %478, %479 : vector<1x1xf32>
    %481 = vector.broadcast %480 : vector<1x1xf32> to vector<1x32xf32>
    %482 = arith.subf %476, %481 : vector<1x32xf32>
    %483 = arith.mulf %482, %482 : vector<1x32xf32>
    %cst_141 = arith.constant dense<0.000000e+00> : vector<1xf32>
    %484 = vector.multi_reduction <add>, %483, %cst_141 [1] : vector<1x32xf32> to vector<1xf32>
    %485 = vector.shape_cast %484 : vector<1xf32> to vector<1x1xf32>
    %cst_142 = arith.constant 3.200000e+01 : f32
    %486 = vector.broadcast %cst_142 : f32 to vector<1x1xf32>
    %487 = arith.divf %485, %486 : vector<1x1xf32>
    %cst_143 = arith.constant 9.99999974E-6 : f32
    %488 = vector.broadcast %cst_143 : f32 to vector<1x1xf32>
    %489 = arith.addf %487, %488 : vector<1x1xf32>
    %490 = math.rsqrt %489 : vector<1x1xf32>
    %491 = vector.broadcast %490 : vector<1x1xf32> to vector<1x32xf32>
    %492 = arith.mulf %482, %491 : vector<1x32xf32>
    %493 = arith.truncf %492 : vector<1x32xf32> to vector<1x32xbf16>
    %c0_144 = arith.constant 0 : index
    %c896_145 = arith.constant 896 : index
    %494 = vector.load %arg3[%c0_144, %c896_145] : memref<32x1024xbf16, #tpu.memory_space<vmem>>, vector<32x3xbf16>
    %cst_146 = arith.constant dense<0.000000e+00> : vector<1x3xf32>
    %495 = tpu.matmul %493, %494, %cst_146 {dimension_numbers = #tpu.dot_dimension_numbers<[1], [0], [0], [1], [0, 0, 1, 1], [], []>} : vector<1x32xbf16>, vector<32x3xbf16>, vector<1x3xf32> -> vector<1x3xf32>
    %c0_147 = arith.constant 0 : index
    %c1152 = arith.constant 1152 : index
    %496 = vector.load %arg4[%c0_147, %c1152] : memref<1x1280xf32, #tpu.memory_space<vmem>>, vector<1x3xf32>
    %497 = arith.addf %495, %496 : vector<1x3xf32>
    %498 = arith.negf %497 : vector<1x3xf32>
    %499 = math.exp %498 : vector<1x3xf32>
    %cst_148 = arith.constant 1.000000e+00 : f32
    %500 = vector.broadcast %cst_148 : f32 to vector<1x3xf32>
    %501 = arith.addf %500, %499 : vector<1x3xf32>
    %502 = arith.divf %500, %501 : vector<1x3xf32>
    %c0_149 = arith.constant 0 : index
    %c0_150 = arith.constant 0 : index
    %c0_151 = arith.constant 0 : index
    %503 = vector.load %arg5[%c0_149, %c0_150, %c0_151] : memref<1x1x3xf32, #tpu.memory_space<vmem>>, vector<1x1x3xf32>
    %504 = vector.shape_cast %503 : vector<1x1x3xf32> to vector<1x3xf32>
    %505 = vector.shape_cast %502 : vector<1x3xf32> to vector<1x1x3xf32>
    tpu.vector_store %arg5[%c0_149, %c0_150, %c0_151], %505 {strides = array<i32>} : memref<1x1x3xf32, #tpu.memory_space<vmem>>, vector<1x1x3xf32>,
    return
  }
  func.func @transform_0(%arg0: i32) -> (i32, i32, i32) {
    %c0_i32 = arith.constant 0 : i32
    %c0_i32_0 = arith.constant 0 : i32
    %c0_i32_1 = arith.constant 0 : i32
    return %arg0, %c0_i32, %c0_i32_0 : i32, i32, i32
  }
  func.func @transform_1(%arg0: i32) -> (i32, i32) {
    %c0_i32 = arith.constant 0 : i32
    %c0_i32_0 = arith.constant 0 : i32
    %c0_i32_1 = arith.constant 0 : i32
    return %c0_i32, %c0_i32_0 : i32, i32
  }
  func.func @transform_2(%arg0: i32) -> (i32, i32) {
    %c0_i32 = arith.constant 0 : i32
    %c0_i32_0 = arith.constant 0 : i32
    %c0_i32_1 = arith.constant 0 : i32
    return %c0_i32, %c0_i32_0 : i32, i32
  }
  func.func @transform_3(%arg0: i32) -> (i32, i32) {
    %c0_i32 = arith.constant 0 : i32
    %c0_i32_0 = arith.constant 0 : i32
    %c0_i32_1 = arith.constant 0 : i32
    return %c0_i32, %c0_i32_0 : i32, i32
  }
  func.func @transform_4(%arg0: i32) -> (i32, i32, i32) {
    %c0_i32 = arith.constant 0 : i32
    %c0_i32_0 = arith.constant 0 : i32
    %c0_i32_1 = arith.constant 0 : i32
    return %arg0, %c0_i32, %c0_i32_0 : i32, i32, i32
  }
}

</mosaic_0001>

<bundles_post_ra>
// kernel: quan8_forward.1
= control target key start
LH: loop header
LB: loop body
LE: loop exit
PB: predicated region body
PF: predicated region fallthrough
CT: control target
= control target key end

     0   :  { %9 = vsyncpa [#allocation3], 0  ;;  %s4162_s0 = inlined_call_operand.vmem [shape: f32[2,8,16], index: 0, kind: input, shape index: {}]   ;;  %s4163_s1 = inlined_call_operand.vmem [shape: f32[16,96], index: 1, kind: input, shape index: {}]   ;;  %s4164_s2 = inlined_call_operand.vmem [shape: bf16[32,1024], index: 2, kind: input, shape index: {}]   ;;  %s4165_s3 = inlined_call_operand.vmem [shape: f32[1,1280], index: 3, kind: input, shape index: {}]   ;;  %s4166_s4 = inlined_call_operand.hbm [shape: f32[2,1,3], index: 4, kind: output, shape index: {}]  }
   0x1   :  { %11 = vsyncpa [#allocation3 + $0x1], 0  ;;  %s3542_s15 = smov 0   ;;  %s3544_s16 = smov 0  }
   0x2   :  { %s3546_s17 = smov 0   ;;  %s3548_s18 = smov 0  }
   0x3 LB: > { %s3563_s19 = sadd.s32 4294967295, %s3498_s18   ;;  %s2847_s20 = sadd.s32 4294967294, %s3498_s18   ;;  %s3498_s18 = sphi %s3548_s18, %s4202_s18   ;;  %s3494_s17 = sphi %s3546_s17, %s4201_s17   ;;  %s3490_s16 = sphi %s3544_s16, %s4200_s16   ;;  %s3486_s15 = sphi %s3542_s15, %s4199_s15  }
   0x4   : > { %s3567_s21 = sadd.s32 1, %s3498_s18   ;;  %s113_s22 = sadd.s32 1, %s3494_s17 }
   0x5   : > { %s110_s23 = ssub.s32 %s3498_s18, %s3567_s21  ;;  %p123_p0 = scmp.ne.s32.totalorder %s3494_s17, %s3490_s16 }
   0x6   : > { %p111_p1 = scmp.eq.s32.totalorder %s110_s23, 0  ;;  %p124_p2 = scmp.eq.s32.totalorder %s3563_s19, 1 }
   0x7   : > { %p129_p3 = scmp.ne.s32.totalorder %s3490_s16, %s3486_s15  ;;  %p130_p4 = scmp.eq.s32.totalorder %s2847_s20, 1 }
   0x8   : > { %s3578_s24 = scalar_select %p111_p1, %s3494_s17, %s113_s22  }
   0x9   : > { %p3580_p5 = por %p124_p2, %p123_p0  ;;  %p3584_p6 = por %p130_p4, %p129_p3 }
   0xa   : > { %p2850_p7 = scmp.ge.s32.totalorder %s3498_s18, 1  ;;  %p164_p8 = scmp.lt.s32.totalorder %s3498_s18, 3 }
   0xc   : > { %p165_p9 = pnand %p2850_p7, %p164_p8 }
   0xd   : > { %p188_p10 = scmp.lt.s32.totalorder (!%p165_p9), %s3563_s19, 1  ;;  %s4177_s12 = smov (!%p165_p9), 64  }
   0xe   : > { %168 = sbr.rel (%p165_p9) target bundleno = 8932 (0x22e4), region = 36  ;;  %s3503_s13 = smov (!%p165_p9), 96  }
   0xf   : > { %s4185_s14 = smov (!%p165_p9), 88   ;;  %s4179_s20 = smov (!%p165_p9), 72  }
  0x10   : > { %s3506_s22 = smov (!%p165_p9), 120   ;;  %s4181_s23 = smov (!%p165_p9), 80  }
  0x11   : > { %s3508_s27 = smov (!%p165_p9), 112   ;;  %s4183_s28 = smov (!%p165_p9), 104  }
  0x12   : > { %s4178_s29 = smov (!%p165_p9), 56   ;;  %s4173_s30 = smov (!%p165_p9), 48  }
  0x13   : > { %v195_v0 = vld [vmem:[%s4163_s1 + $0x8] sm:$0xff]  ;;  %v3500_v1 = vmov 0.0   ;;  %v194_v2 = vld [vmem:[%s4163_s1] sm:$0xff]  ;;  %vm3501_vm0 = vmmov 0   ;;  %s189_s5 = scalar_select %p188_p10, %s3563_s19, 1  ;;  %vm203_vm1 = vcmask 130048  }
  0x14   : > { %3016 = vmatprep.subr.mxu0 %v3500_v1  ;;  %3020 = vmatprep.mubr.msk.f32.mxu0 %vm3501_vm0, %v3500_v1  ;;  %v2852_v4 = vld [vmem:[%s4165_s3] ss:$0 sm:$0xff]  ;;  %vm345_vm2 = vcmask 1043456   ;;  %vm281_vm3 = vcmask 64512   ;;  %s4169_s7 = smov 16   ;;  %s4167_s8 = smov 24  }
  0x15   : > { %3017 = vmatpush3.msra.mxu0 %v195_v0  ;;  %3023 = vmatprep.subr.bf16.mxu1 %v3500_v1  ;;  %s2851_s6 = sshll.u32 %s189_s5, 3  ;;  %s4175_s5 = smov 40   ;;  %vm733_vm4 = vcmask 195584   ;;  %vm741_vm5 = vcmask 261120   ;;  %vm2206_vm6 = vcmask 57344   ;;  %vm2620_vm7 = vcmask 253952  }
  0x16   : > { %3018 = vmatprep.subr.mxu0 %v3500_v1  ;;  %3025 = vmatprep.mubr.msk.bf16.mxu1 %vm3501_vm0, %v3500_v1  ;;  %s191_s9 = scalar_lea.vmem %s4162_s0, %s2851_s6  ;;  %s4171_s6 = smov 8   ;;  %vm2777_vm8 = vcmask 16384  }
  0x17   : > { %3019 = vmatpush3.msra.mxu0 %v194_v2  ;;  %v193_v3 = vld [vmem:[%s191_s9] sm:$0xff]  ;;  %s4189_s9 = smov 48   ;;  %s4190_s10 = smov 8  }
  0x18   : > { %3029 = vmatprep.subr.bf16.mxu0 %v3500_v1  ;;  %3021 = vmatmul.mubr.msk.f32.vlgmr.msra.gmra.mxu0 %vm203_vm1, %v193_v3  ;;  %s4191_s11 = smov 16  }
  0x19   : > { %3031 = vmatprep.mubr.msk.bf16.mxu0 %vm3501_vm0, %v3500_v1 }
  0xd8   : > { %v273_v5 = vpop.f32.mrf.mxu0 }
  0xd9   : > { %v3615_v6 = vadd.f32 %v2852_v4, %v273_v5 }
  0xda   : > { %v3022_v7 = vpop.f32.mrf.mxu0 }
  0xdb   : > { %v3619_v8 = vpack.c.bf16 %v3615_v6, %v3615_v6 }
  0xdd   : > { %340 = vrot.lane.b32.xlu1 %v3619_v8, %s4177_s12  ;;  %279 = vrot.lane.b32.xlu0 %v3619_v8, %s3503_s13 }
  0xe1   : > { %391 = vrot.lane.b32.xlu1 %v3619_v8, %s4185_s14 }
 0x14f   : > { %v341_v9 = vpop.permute.xlu1 %340  ;;  %v280_v10 = vpop.permute.xlu0 %279 }
 0x150   : > { %v347_v11 = vsel %vm345_vm2, %v341_v9, 0  ;;  %v286_v12 = vsel %vm281_vm3, %v280_v10, 0 }
 0x151   : > { %3024 = vmatpush3.bf16.xpose.msra.mxu1 %v286_v12  ;;  %3030 = vmatpush3.bf16.msra.mxu0 %v347_v11 }
 0x152   : > { %3035 = vmatprep.subr.bf16.mxu0 %v3500_v1  ;;  %3041 = vmatprep.subr.bf16.mxu1 %v3500_v1 }
 0x153   : > { %v392_v23 = vpop.permute.xlu1 %391 }
 0x154   : > { %v397_v29 = vsel %vm281_vm3, %v392_v23, 0 }
 0x158   : > { %3026 = vmatmul.mubr.msk.bf16.vlgmr.msra.gmra.mxu1 %vm281_vm3, %v3619_v8 }
 0x159   : > { %3043 = vmatprep.mubr.msk.bf16.mxu1 %vm3501_vm0, %v3500_v1 }
 0x218   : > { %v322_v13 = vpop.f32.mrf.mxu1 }
 0x219   : > { %v328_v14 = vsel %vm281_vm3, %v322_v13, -inf }
 0x21a   : > { %329 = vmax.xlane.f32.xlu0 %v328_v14  ;;  %v3027_v15 = vpop.f32.mrf.mxu1 }
 0x21c   : > { %v325_v16 = vpop.f32.mrf.mxu1 }
 0x21e   : > { %v3028_v17 = vpop.f32.mrf.mxu1 }
 0x230   : > { %611 = vrot.lane.b32.xlu0 %v3619_v8, %s4179_s20 }
 0x2a3   : > { %v330_v18 = vpop.xlane.xlu0 %329 }
 0x2a4   : > { %v331_v19 = vsub.f32 %v322_v13, %v330_v18 }
 0x2a6   : > { %v332_v20 = vmul.f32 1.442695, %v331_v19 }
 0x2a7   : > { %v612_v32 = vpop.permute.xlu0 %611 }
 0x2a8   : > { %3334 = vpow2.f32 %v332_v20  ;;  %v617_v34 = vsel %vm281_vm3, %v612_v32, 0 }
 0x2b5   : > { %v3335_v21 = vpop.eup %3334 }
 0x2b6   : > { %v334_v22 = vsel %vm281_vm3, %v3335_v21, 0.0 }
 0x2b7   : > { %335 = vadd.xlane.f32.xlu1 %v334_v22 }
 0x2c8   : > { %389 = vrot.lane.b32.xlu1 %v3619_v8, %s3506_s22 }
 0x2cc   : > { %501 = vrot.lane.b32.xlu1 %v3619_v8, %s4181_s23 }
 0x2d0   : > { %499 = vrot.lane.b32.xlu1 %v3619_v8, %s3508_s27 }
 0x2d4   : > { %609 = vrot.lane.b32.xlu1 %v3619_v8, %s4183_s28 }
 0x340   : > { %v336_v24 = vpop.xlane.xlu1 %335 }
 0x341   : > { %3336 = vrcp.f32 %v336_v24 }
 0x344   : > { %v390_v28 = vpop.permute.xlu1 %389 }
 0x348   : > { %v502_v30 = vpop.permute.xlu1 %501 }
 0x349   : > { %v507_v31 = vsel %vm281_vm3, %v502_v30, 0 }
 0x34c   : > { %v500_v33 = vpop.permute.xlu1 %499 }
 0x34e   : > { %v3337_v25 = vpop.eup %3336 }
 0x34f   : > { %v338_v26 = vmul.f32 %v3337_v25, %v3335_v21 }
 0x350   : > { %v610_v35 = vpop.permute.xlu1 %609 }
 0x351   : > { %v339_v27 = vpack.c.bf16 %v338_v26, %v338_v26 }
 0x353   : > { %3032 = vmatmul.mubr.msk.bf16.vlgmr.msra.gmra.mxu0 %vm281_vm3, %v339_v27 }
 0x354   : > { %3036 = vmatpush3.bf16.xpose.msra.mxu0 %v397_v29  ;;  %3037 = vmatprep.mubr.msk.bf16.mxu0 %vm3501_vm0, %v3500_v1 }
 0x355   : > { %3047 = vmatprep.subr.bf16.mxu0 %v3500_v1 }
 0x35b   : > { %3038 = vmatmul.mubr.msk.bf16.vlgmr.msra.gmra.mxu0 %vm281_vm3, %v390_v28 }
 0x35c   : > { %3048 = vmatpush3.bf16.xpose.msra.mxu0 %v507_v31  ;;  %3049 = vmatprep.mubr.msk.bf16.mxu0 %vm3501_vm0, %v3500_v1 }
 0x35d   : > { %3059 = vmatprep.subr.bf16.mxu0 %v3500_v1 }
 0x363   : > { %3050 = vmatmul.mubr.msk.bf16.vlgmr.msra.gmra.mxu0 %vm281_vm3, %v500_v33 }
 0x364   : > { %3060 = vmatpush3.bf16.xpose.msra.mxu0 %v617_v34  ;;  %3061 = vmatprep.mubr.msk.bf16.mxu0 %vm3501_vm0, %v3500_v1 }
 0x365   : > { %3071 = vmatprep.subr.bf16.mxu0 %v3500_v1 }
 0x36b   : > { %3062 = vmatmul.mubr.msk.bf16.vlgmr.msra.gmra.mxu0 %vm281_vm3, %v610_v35 }
 0x36c   : > { %3075 = vmatprep.mubr.msk.bf16.mxu0 %vm3501_vm0, %v3500_v1 }
 0x413   : > { %v3665_v36 = vpop.f32.mrf.mxu0 }
 0x415   : > { %v3033_v37 = vpop.f32.mrf.mxu0 }
 0x417   : > { %v386_v38 = vpop.f32.mrf.mxu0 }
 0x419   : > { %v3034_v39 = vpop.f32.mrf.mxu0 }
 0x41b   : > { %v433_v40 = vpop.f32.mrf.mxu0 }
 0x41c   : > { %v439_v41 = vsel %vm281_vm3, %v433_v40, -inf }
 0x41d   : > { %440 = vmax.xlane.f32.xlu1 %v439_v41  ;;  %v3039_v42 = vpop.f32.mrf.mxu0 }
 0x41f   : > { %v436_v43 = vpop.f32.mrf.mxu0 }
 0x421   : > { %v3040_v44 = vpop.f32.mrf.mxu0 }
 0x423   : > { %v543_v45 = vpop.f32.mrf.mxu0 }
 0x424   : > { %v549_v46 = vsel %vm281_vm3, %v543_v45, -inf }
 0x425   : > { %550 = vmax.xlane.f32.xlu0 %v549_v46  ;;  %v3051_v47 = vpop.f32.mrf.mxu0 }
 0x427   : > { %v546_v48 = vpop.f32.mrf.mxu0 }
 0x429   : > { %v3052_v49 = vpop.f32.mrf.mxu0 }
 0x42b   : > { %v653_v50 = vpop.f32.mrf.mxu0 }
 0x42c   : > { %v659_v51 = vsel %vm281_vm3, %v653_v50, -inf }
 0x42d   : > { %660 = vmax.xlane.f32.xlu1 %v659_v51  ;;  %v3063_v52 = vpop.f32.mrf.mxu0 }
 0x42e   : > { %v739_v52 = vld [vmem:[%s4164_s2 + $0x68] sm:$0xf] }
 0x42f   : > { %v656_v53 = vpop.f32.mrf.mxu0 }
 0x431   : > { %v3064_v54 = vpop.f32.mrf.mxu0 }
 0x432   : > { %v737_v54 = vld [vmem:[%s4164_s2 + $0x28] sm:$0xf] }
 0x4a6   : > { %v441_v55 = vpop.xlane.xlu1 %440 }
 0x4a7   : > { %v442_v56 = vsub.f32 %v433_v40, %v441_v55 }
 0x4a9   : > { %v443_v57 = vmul.f32 1.442695, %v442_v56 }
 0x4ab   : > { %3338 = vpow2.f32 %v443_v57 }
 0x4ae   : > { %v551_v2 = vpop.xlane.xlu0 %550 }
 0x4af   : > { %v552_v3 = vsub.f32 %v543_v45, %v551_v2 }
 0x4b1   : > { %v553_v4 = vmul.f32 1.442695, %v552_v3 }
 0x4b6   : > { %v661_v58 = vpop.xlane.xlu1 %660 }
 0x4b7   : > { %v662_v59 = vsub.f32 %v653_v50, %v661_v58 }
 0x4b8   : > { %v3339_v60 = vpop.eup %3338 }
 0x4b9   : > { %v663_v61 = vmul.f32 1.442695, %v662_v59  ;;  %v445_v62 = vsel %vm281_vm3, %v3339_v60, 0.0 }
 0x4ba   : > { %446 = vadd.xlane.f32.xlu1 %v445_v62  ;;  %v2862_v62 = vld [vmem:[%s4165_s3 + $0x3] ss:$0 sm:$0xff] }
 0x4bb   : > { %3340 = vpow2.f32 %v663_v61 }
 0x4bc   : > { %3342 = vpow2.f32 %v553_v4 }
 0x4c8   : > { %v3341_v63 = vpop.eup %3340 }
 0x4c9   : > { %v665_v0 = vsel %vm281_vm3, %v3341_v63, 0.0  ;;  %v3343_v5 = vpop.eup %3342 }
 0x4ca   : > { %666 = vadd.xlane.f32.xlu0 %v665_v0  ;;  %v555_v7 = vsel %vm281_vm3, %v3343_v5, 0.0 }
 0x4cb   : > { %451 = vrot.lane.b32.xlu1 %v3619_v8, %s4178_s29 }
 0x4e0   : > { %561 = vrot.lane.b32.xlu0 %v3619_v8, %s4173_s30  ;;  %s4192_s30 = smov 24  }
 0x4ef   : > { %556 = vadd.xlane.f32.xlu1 %v555_v7 }
 0x500   : > { %671 = vrot.lane.b32.xlu1 %v3619_v8, %s4175_s5  ;;  %s4194_s5 = smov 80  }
 0x543   : > { %v447_v9 = vpop.xlane.xlu1 %446 }
 0x544   : > { %3344 = vrcp.f32 %v447_v9 }
 0x547   : > { %v452_v10 = vpop.permute.xlu1 %451 }
 0x548   : > { %v457_v11 = vsel %vm345_vm2, %v452_v10, 0 }
 0x549   : > { %3042 = vmatpush3.bf16.msra.mxu1 %v457_v11 }
 0x54a   : > { %3053 = vmatprep.subr.bf16.mxu1 %v3500_v1 }
 0x551   : > { %v3345_v12 = vpop.eup %3344 }
 0x552   : > { %v449_v13 = vmul.f32 %v3345_v12, %v3339_v60 }
 0x553   : > { %v667_v14 = vpop.xlane.xlu0 %666 }
 0x554   : > { %v450_v15 = vpack.c.bf16 %v449_v13, %v449_v13 }
 0x556   : > { %3044 = vmatmul.mubr.msk.bf16.vlgmr.msra.gmra.mxu1 %vm281_vm3, %v450_v15 }
 0x557   : > { %v562_v16 = vpop.permute.xlu0 %561  ;;  %3055 = vmatprep.mubr.msk.bf16.mxu1 %vm3501_vm0, %v3500_v1 }
 0x558   : > { %v567_v8 = vsel %vm345_vm2, %v562_v16, 0 }
 0x559   : > { %3054 = vmatpush3.bf16.msra.mxu1 %v567_v8 }
 0x55a   : > { %3065 = vmatprep.subr.bf16.mxu1 %v3500_v1 }
 0x578   : > { %v557_v17 = vpop.xlane.xlu1 %556 }
 0x579   : > { %3346 = vrcp.f32 %v557_v17  ;;  %v841_v17 = vld [vmem:[%s4164_s2 + $0x40] sm:$0xf] }
 0x57a   : > { %3348 = vrcp.f32 %v667_v14 }
 0x57c   : > { %v672_v20 = vpop.permute.xlu1 %671 }
 0x57d   : > { %v677_v23 = vsel %vm345_vm2, %v672_v20, 0 }
 0x586   : > { %v3347_v18 = vpop.eup %3346 }
 0x587   : > { %v559_v19 = vmul.f32 %v3347_v18, %v3343_v5  ;;  %v3349_v22 = vpop.eup %3348  ;;  %v842_v18 = vld [vmem:[%s4164_s2 + $0x60] sm:$0xf] }
 0x588   : > { %v669_v24 = vmul.f32 %v3349_v22, %v3341_v63  ;;  %v2869_v20 = vcombine.low %v841_v17, %v842_v18 }
 0x589   : > { %v560_v21 = vpack.c.bf16 %v559_v19, %v559_v19  ;;  %v839_v19 = vld [vmem:[%s4164_s2] sm:$0xf] }
 0x58a   : > { %v670_v25 = vpack.c.bf16 %v669_v24, %v669_v24 }
 0x58b   : > { %3056 = vmatmul.mubr.msk.bf16.vlgmr.msra.gmra.mxu1 %vm281_vm3, %v560_v21  ;;  %v840_v21 = vld [vmem:[%s4164_s2 + $0x20] sm:$0xf] }
 0x58c   : > { %3066 = vmatpush3.bf16.msra.mxu1 %v677_v23  ;;  %3067 = vmatprep.mubr.msk.bf16.mxu1 %vm3501_vm0, %v3500_v1  ;;  %v2868_v22 = vcombine.low %v839_v19, %v840_v21 }
 0x58d   : > { %3079 = vmatprep.subr.bf16.mxu1 %v3500_v1 }
 0x593   : > { %3068 = vmatmul.mubr.msk.bf16.vlgmr.msra.gmra.mxu1 %vm281_vm3, %v670_v25 }
 0x594   : > { %3083 = vmatprep.mubr.msk.bf16.mxu1 %vm3501_vm0, %v3500_v1  ;;  %3080 = vmatpush3.bf16.msra.mxu1 %v2869_v20 }
 0x595   : > { %3081 = vmatprep.subr.bf16.mxu1 %v3500_v1 }
 0x598   : > { %3082 = vmatpush3.bf16.msra.mxu1 %v2868_v22 }
 0x599   : > { %3093 = vmatprep.subr.bf16.mxu1 %v3500_v1 }
 0x616   : > { %v493_v26 = vpop.f32.mrf.mxu1 }
 0x617   : > { %720 = vrot.lane.b32.xlu1 %v493_v26, %s4171_s6  ;;  %s4195_s6 = smov 72  }
 0x618   : > { %v3045_v27 = vpop.f32.mrf.mxu1 }
 0x61a   : > { %v496_v28 = vpop.f32.mrf.mxu1 }
 0x61c   : > { %v3046_v29 = vpop.f32.mrf.mxu1 }
 0x61d   : > { %v2867_v29 = vld [vmem:[%s4165_s3 + $0x1] ss:$0 sm:$0xff] }
 0x64b   : > { %v603_v30 = vpop.f32.mrf.mxu1 }
 0x64c   : > { %724 = vrot.lane.b32.xlu0 %v603_v30, %s4169_s7  ;;  %s4196_s7 = smov 56  }
 0x64d   : > { %v3057_v31 = vpop.f32.mrf.mxu1 }
 0x64f   : > { %v606_v32 = vpop.f32.mrf.mxu1 }
 0x651   : > { %v3058_v33 = vpop.f32.mrf.mxu1 }
 0x653   : > { %v713_v34 = vpop.f32.mrf.mxu1 }
 0x654   : > { %728 = vrot.lane.b32.xlu1 %v713_v34, %s4167_s8  ;;  %s4188_s8 = smov 40  }
 0x655   : > { %v3069_v35 = vpop.f32.mrf.mxu1 }
 0x657   : > { %v716_v37 = vpop.f32.mrf.mxu1 }
 0x659   : > { %v3070_v38 = vpop.f32.mrf.mxu1 }
 0x689   : > { %v721_v39 = vpop.permute.xlu1 %720 }
 0x68a   : > { %v731_v41 = vsel %vm281_vm3, %v3665_v36, %v721_v39  ;;  %v738_v36 = vld [vmem:[%s4164_s2 + $0x48] sm:$0xf] }
 0x68b   : > { %v2864_v53 = vcombine.low %v738_v36, %v739_v52 }
 0x68d   : > { %3072 = vmatpush3.bf16.msra.mxu0 %v2864_v53 }
 0x68e   : > { %3073 = vmatprep.subr.bf16.mxu0 %v3500_v1 }
 0x6be   : > { %v725_v40 = vpop.permute.xlu0 %724 }
 0x6bf   : > { %v732_v42 = vsel %vm203_vm1, %v731_v41, %v725_v40 }
 0x6c6   : > { %v729_v43 = vpop.permute.xlu1 %728 }
 0x6c7   : > { %v734_v44 = vsel %vm733_vm4, %v732_v42, %v729_v43 }
 0x6c8   : > { %v735_v45 = vadd.f32 %v734_v44, %v3615_v6  ;;  %v736_v6 = vld [vmem:[%s4164_s2 + $0x8] sm:$0xf] }
 0x6c9   : > { %v2863_v55 = vcombine.low %v736_v6, %v737_v54 }
 0x6ca   : > { %v742_v46 = vsel %vm741_vm5, %v735_v45, 0.0 }
 0x6cb   : > { %743 = vadd.xlane.f32.xlu0 %v742_v46  ;;  %3074 = vmatpush3.bf16.msra.mxu0 %v2863_v55 }
 0x6cc   : > { %3087 = vmatprep.subr.bf16.mxu0 %v3500_v1 }
 0x754   : > { %v744_v47 = vpop.xlane.xlu0 %743 }
 0x755   : > { %v746_v48 = vmul.f32 0.03125, %v744_v47 }
 0x757   : > { %v747_v49 = vsub.f32 %v735_v45, %v746_v48 }
 0x759   : > { %v748_v50 = vmul.f32 %v747_v49, %v747_v49 }
 0x75b   : > { %v749_v51 = vsel %vm741_vm5, %v748_v50, 0.0 }
 0x75c   : > { %750 = vadd.xlane.f32.xlu1 %v749_v51 }
 0x7e5   : > { %v751_v56 = vpop.xlane.xlu1 %750 }
 0x7e6   : > { %v752_v57 = vmul.f32 0.03125, %v751_v56 }
 0x7e8   : > { %v753_v58 = vadd.f32 1e-05, %v752_v57 }
 0x7ea   : > { %3350 = vrsqrt.f32 %v753_v58 }
 0x7f7   : > { %v3351_v59 = vpop.eup %3350 }
 0x7f8   : > { %v755_v60 = vmul.f32 %v3351_v59, %v747_v49 }
 0x7fa   : > { %v756_v61 = vpack.c.bf16 %v755_v60, %v755_v60 }
 0x7fc   : > { %3076 = vmatmul.mubr.msk.bf16.vlgmr.msra.gmra.mxu0 %vm741_vm5, %v756_v61 }
 0x7fd   : > { %3089 = vmatprep.mubr.msk.bf16.mxu0 %vm3501_vm0, %v3500_v1 }
 0x8bc   : > { %v812_v63 = vpop.f32.mrf.mxu0 }
 0x8bd   : > { %v813_v0 = vadd.f32 %v2862_v62, %v812_v63 }
 0x8be   : > { %v3077_v2 = vpop.f32.mrf.mxu0 }
 0x8bf   : > { %v2866_v3 = vmul.f32 -1.442695, %v813_v0 }
 0x8c0   : > { %v815_v4 = vpop.f32.mrf.mxu0 }
 0x8c1   : > { %3352 = vpow2.f32 %v2866_v3 }
 0x8c2   : > { %v3078_v5 = vpop.f32.mrf.mxu0 }
 0x8ce   : > { %v3353_v7 = vpop.eup %3352 }
 0x8cf   : > { %v821_v9 = vadd.f32 1.0, %v3353_v7 }
 0x8d1   : > { %3354 = vrcp.f32 %v821_v9 }
 0x8de   : > { %v3355_v10 = vpop.eup %3354 }
 0x8df   : > { %v824_v11 = vadd.f32 %v3355_v10, %v755_v60 }
 0x8e1   : > { %v825_v12 = vsel %vm741_vm5, %v824_v11, 0.0 }
 0x8e2   : > { %826 = vadd.xlane.f32.xlu0 %v825_v12 }
 0x96b   : > { %v827_v13 = vpop.xlane.xlu0 %826 }
 0x96c   : > { %v828_v14 = vmul.f32 0.03125, %v827_v13 }
 0x96e   : > { %v829_v15 = vsub.f32 %v824_v11, %v828_v14 }
 0x970   : > { %v830_v16 = vmul.f32 %v829_v15, %v829_v15 }
 0x972   : > { %v831_v8 = vsel %vm741_vm5, %v830_v16, 0.0 }
 0x973   : > { %832 = vadd.xlane.f32.xlu0 %v831_v8 }
 0x9fc   : > { %v833_v23 = vpop.xlane.xlu0 %832 }
 0x9fd   : > { %v834_v24 = vmul.f32 0.03125, %v833_v23 }
 0x9ff   : > { %v835_v25 = vadd.f32 1e-05, %v834_v24 }
 0xa01   : > { %3356 = vrsqrt.f32 %v835_v25 }
 0xa0e   : > { %v3357_v26 = vpop.eup %3356 }
 0xa0f   : > { %v837_v27 = vmul.f32 %v3357_v26, %v829_v15 }
 0xa11   : > { %v838_v28 = vpack.c.bf16 %v837_v27, %v837_v27 }
 0xa13   : > { %3084 = vmatmul.mubr.msk.bf16.vlgmr.msra.gmra.mxu1 %vm741_vm5, %v838_v28 }
 0xa14   : > { %3095 = vmatprep.mubr.msk.bf16.mxu1 %vm3501_vm0, %v3500_v1 }
 0xad3   : > { %v899_v30 = vpop.f32.mrf.mxu1 }
 0xad4   : > { %v3746_v31 = vadd.f32 %v2867_v29, %v899_v30 }
 0xad5   : > { %v3085_v32 = vpop.f32.mrf.mxu1 }
 0xad6   : > { %v3750_v33 = vpack.c.bf16 %v3746_v31, %v3746_v31 }
 0xad7   : > { %v902_v34 = vpop.f32.mrf.mxu1 }
 0xad8   : > { %1017 = vrot.lane.b32.xlu0 %v3750_v33, %s4185_s14  ;;  %907 = vrot.lane.b32.xlu1 %v3750_v33, %s3503_s13 }
 0xad9   : > { %v3086_v35 = vpop.f32.mrf.mxu1 }
 0xadc   : > { %1125 = vrot.lane.b32.xlu0 %v3750_v33, %s3508_s27  ;;  %1015 = vrot.lane.b32.xlu1 %v3750_v33, %s3506_s22 }
 0xae0   : > { %1235 = vrot.lane.b32.xlu0 %v3750_v33, %s4183_s28  ;;  %1127 = vrot.lane.b32.xlu1 %v3750_v33, %s4181_s23 }
 0xae4   : > { %1237 = vrot.lane.b32.xlu1 %v3750_v33, %s4179_s20 }
 0xb4a   : > { %v908_v37 = vpop.permute.xlu1 %907  ;;  %v1018_v39 = vpop.permute.xlu0 %1017 }
 0xb4b   : > { %v913_v38 = vsel %vm281_vm3, %v908_v37, 0  ;;  %v1023_v41 = vsel %vm281_vm3, %v1018_v39, 0 }
 0xb4c   : > { %3088 = vmatpush3.bf16.xpose.msra.mxu0 %v913_v38 }
 0xb4d   : > { %3099 = vmatprep.subr.bf16.mxu0 %v3500_v1 }
 0xb4e   : > { %v1016_v40 = vpop.permute.xlu1 %1015  ;;  %v1126_v45 = vpop.permute.xlu0 %1125 }
 0xb52   : > { %v1128_v42 = vpop.permute.xlu1 %1127  ;;  %v1236_v47 = vpop.permute.xlu0 %1235 }
 0xb53   : > { %3090 = vmatmul.mubr.msk.bf16.vlgmr.msra.gmra.mxu0 %vm281_vm3, %v3750_v33  ;;  %v1133_v43 = vsel %vm281_vm3, %v1128_v42, 0 }
 0xb54   : > { %3100 = vmatpush3.bf16.xpose.msra.mxu0 %v1023_v41  ;;  %3101 = vmatprep.mubr.msk.bf16.mxu0 %vm3501_vm0, %v3500_v1 }
 0xb55   : > { %3111 = vmatprep.subr.bf16.mxu0 %v3500_v1 }
 0xb56   : > { %v1238_v44 = vpop.permute.xlu1 %1237 }
 0xb57   : > { %v1243_v46 = vsel %vm281_vm3, %v1238_v44, 0 }
 0xb5b   : > { %3102 = vmatmul.mubr.msk.bf16.vlgmr.msra.gmra.mxu0 %vm281_vm3, %v1016_v40 }
 0xb5c   : > { %3112 = vmatpush3.bf16.xpose.msra.mxu0 %v1133_v43  ;;  %3113 = vmatprep.mubr.msk.bf16.mxu0 %vm3501_vm0, %v3500_v1 }
 0xb5d   : > { %3123 = vmatprep.subr.bf16.mxu0 %v3500_v1 }
 0xb63   : > { %3114 = vmatmul.mubr.msk.bf16.vlgmr.msra.gmra.mxu0 %vm281_vm3, %v1126_v45 }
 0xb64   : > { %3124 = vmatpush3.bf16.xpose.msra.mxu0 %v1243_v46  ;;  %3125 = vmatprep.mubr.msk.bf16.mxu0 %vm3501_vm0, %v3500_v1 }
 0xb65   : > { %3135 = vmatprep.subr.bf16.mxu0 %v3500_v1 }
 0xb6b   : > { %3126 = vmatmul.mubr.msk.bf16.vlgmr.msra.gmra.mxu0 %vm281_vm3, %v1236_v47 }
 0xb6c   : > { %3139 = vmatprep.mubr.msk.bf16.mxu0 %vm3501_vm0, %v3500_v1 }
 0xc13   : > { %v949_v48 = vpop.f32.mrf.mxu0 }
 0xc14   : > { %v955_v49 = vsel %vm281_vm3, %v949_v48, -inf }
 0xc15   : > { %956 = vmax.xlane.f32.xlu1 %v955_v49  ;;  %v3091_v50 = vpop.f32.mrf.mxu0 }
 0xc17   : > { %v952_v51 = vpop.f32.mrf.mxu0 }
 0xc19   : > { %v3092_v36 = vpop.f32.mrf.mxu0 }
 0xc1b   : > { %v1059_v52 = vpop.f32.mrf.mxu0 }
 0xc1c   : > { %v1065_v6 = vsel %vm281_vm3, %v1059_v52, -inf }
 0xc1d   : > { %1066 = vmax.xlane.f32.xlu0 %v1065_v6  ;;  %v3103_v53 = vpop.f32.mrf.mxu0 }
 0xc1f   : > { %v1062_v54 = vpop.f32.mrf.mxu0 }
 0xc21   : > { %v3104_v55 = vpop.f32.mrf.mxu0 }
 0xc23   : > { %v1169_v56 = vpop.f32.mrf.mxu0 }
 0xc24   : > { %v1175_v57 = vsel %vm281_vm3, %v1169_v56, -inf }
 0xc25   : > { %1176 = vmax.xlane.f32.xlu0 %v1175_v57  ;;  %v3115_v58 = vpop.f32.mrf.mxu0 }
 0xc27   : > { %v1172_v59 = vpop.f32.mrf.mxu0 }
 0xc29   : > { %v3116_v60 = vpop.f32.mrf.mxu0 }
 0xc2b   : > { %v1279_v61 = vpop.f32.mrf.mxu0 }
 0xc2c   : > { %v1285_v62 = vsel %vm281_vm3, %v1279_v61, -inf }
 0xc2d   : > { %1286 = vmax.xlane.f32.xlu1 %v1285_v62  ;;  %v3127_v63 = vpop.f32.mrf.mxu0 }
 0xc2f   : > { %v1282_v0 = vpop.f32.mrf.mxu0 }
 0xc31   : > { %v3128_v2 = vpop.f32.mrf.mxu0 }
 0xc9e   : > { %v957_v3 = vpop.xlane.xlu1 %956 }
 0xc9f   : > { %v958_v4 = vsub.f32 %v949_v48, %v957_v3 }
 0xca1   : > { %v959_v5 = vmul.f32 1.442695, %v958_v4 }
 0xca3   : > { %3358 = vpow2.f32 %v959_v5 }
 0xca6   : > { %v1067_v7 = vpop.xlane.xlu0 %1066 }
 0xca7   : > { %v1068_v9 = vsub.f32 %v1059_v52, %v1067_v7 }
 0xca9   : > { %v1069_v10 = vmul.f32 1.442695, %v1068_v9 }
 0xcab   : > { %3360 = vpow2.f32 %v1069_v10 }
 0xcae   : > { %v1177_v11 = vpop.xlane.xlu0 %1176 }
 0xcaf   : > { %v1178_v12 = vsub.f32 %v1169_v56, %v1177_v11 }
 0xcb0   : > { %v3359_v13 = vpop.eup %3358 }
 0xcb1   : > { %v1179_v14 = vmul.f32 1.442695, %v1178_v12  ;;  %v961_v15 = vsel %vm281_vm3, %v3359_v13, 0.0 }
 0xcb2   : > { %962 = vadd.xlane.f32.xlu0 %v961_v15 }
 0xcb3   : > { %3362 = vpow2.f32 %v1179_v14 }
 0xcb6   : > { %v1287_v19 = vpop.xlane.xlu1 %1286 }
 0xcb7   : > { %v1288_v20 = vsub.f32 %v1279_v61, %v1287_v19 }
 0xcb8   : > { %v3361_v16 = vpop.eup %3360 }
 0xcb9   : > { %v1071_v8 = vsel %vm281_vm3, %v3361_v16, 0.0  ;;  %v1289_v21 = vmul.f32 1.442695, %v1288_v20 }
 0xcba   : > { %1072 = vadd.xlane.f32.xlu1 %v1071_v8  ;;  %v1364_v8 = vld [vmem:[%s4164_s2 + $0x6c] sm:$0xf] }
 0xcbb   : > { %3364 = vpow2.f32 %v1289_v21 }
 0xcc0   : > { %v3363_v17 = vpop.eup %3362 }
 0xcc1   : > { %v1181_v18 = vsel %vm281_vm3, %v3363_v17, 0.0 }
 0xcc2   : > { %1182 = vadd.xlane.f32.xlu0 %v1181_v18  ;;  %v1362_v18 = vld [vmem:[%s4164_s2 + $0x2c] sm:$0xf] }
 0xcc8   : > { %v3365_v22 = vpop.eup %3364 }
 0xcc9   : > { %v1291_v23 = vsel %vm281_vm3, %v3365_v22, 0.0 }
 0xccb   : > { %1077 = vrot.lane.b32.xlu1 %v3750_v33, %s4178_s29  ;;  %s4193_s29 = smov 104  }
 0xcd8   : > { %967 = vrot.lane.b32.xlu0 %v3750_v33, %s4177_s12  ;;  %s4197_s12 = smov 64  }
 0xcdc   : > { %1297 = vrot.lane.b32.xlu0 %v3750_v33, %s4188_s8 }
 0xcef   : > { %1292 = vadd.xlane.f32.xlu1 %v1291_v23 }
 0xd00   : > { %1187 = vrot.lane.b32.xlu1 %v3750_v33, %s4189_s9 }
 0xd3b   : > { %v963_v24 = vpop.xlane.xlu0 %962 }
 0xd3c   : > { %3366 = vrcp.f32 %v963_v24 }
 0xd43   : > { %v1073_v25 = vpop.xlane.xlu1 %1072 }
 0xd44   : > { %3368 = vrcp.f32 %v1073_v25 }
 0xd47   : > { %v1078_v32 = vpop.permute.xlu1 %1077 }
 0xd48   : > { %v1083_v37 = vsel %vm345_vm2, %v1078_v32, 0 }
 0xd49   : > { %v3367_v26 = vpop.eup %3366 }
 0xd4a   : > { %v965_v28 = vmul.f32 %v3367_v26, %v3359_v13  ;;  %v2879_v26 = vld [vmem:[%s4165_s3 + $0x4] ss:$0 sm:$0xff] }
 0xd4b   : > { %v1183_v27 = vpop.xlane.xlu0 %1182 }
 0xd4c   : > { %v966_v34 = vpack.c.bf16 %v965_v28, %v965_v28  ;;  %3370 = vrcp.f32 %v1183_v27 }
 0xd4f   : > { %v968_v29 = vpop.permute.xlu0 %967 }
 0xd50   : > { %v973_v30 = vsel %vm345_vm2, %v968_v29, 0 }
 0xd51   : > { %3094 = vmatpush3.bf16.msra.mxu1 %v973_v30  ;;  %v3369_v35 = vpop.eup %3368 }
 0xd52   : > { %3105 = vmatprep.subr.bf16.mxu1 %v3500_v1  ;;  %v1075_v33 = vmul.f32 %v3369_v35, %v3361_v16  ;;  %v1363_v16 = vld [vmem:[%s4164_s2 + $0x4c] sm:$0xf] }
 0xd53   : > { %v1298_v44 = vpop.permute.xlu0 %1297 }
 0xd54   : > { %3096 = vmatmul.mubr.msk.bf16.vlgmr.msra.gmra.mxu1 %vm281_vm3, %v966_v34  ;;  %v1076_v38 = vpack.c.bf16 %v1075_v33, %v1075_v33  ;;  %v1303_v46 = vsel %vm345_vm2, %v1298_v44, 0 }
 0xd55   : > { %3106 = vmatpush3.bf16.msra.mxu1 %v1083_v37  ;;  %3107 = vmatprep.mubr.msk.bf16.mxu1 %vm3501_vm0, %v3500_v1 }
 0xd56   : > { %3117 = vmatprep.subr.bf16.mxu1 %v3500_v1 }
 0xd59   : > { %v3371_v39 = vpop.eup %3370 }
 0xd5a   : > { %v1185_v41 = vmul.f32 %v3371_v39, %v3363_v17  ;;  %v2881_v17 = vcombine.low %v1363_v16, %v1364_v8 }
 0xd5c   : > { %3108 = vmatmul.mubr.msk.bf16.vlgmr.msra.gmra.mxu1 %vm281_vm3, %v1076_v38  ;;  %v1186_v45 = vpack.c.bf16 %v1185_v41, %v1185_v41  ;;  %3136 = vmatpush3.bf16.msra.mxu0 %v2881_v17 }
 0xd5d   : > { %3119 = vmatprep.mubr.msk.bf16.mxu1 %vm3501_vm0, %v3500_v1  ;;  %3137 = vmatprep.subr.bf16.mxu0 %v3500_v1 }
 0xd78   : > { %v1293_v40 = vpop.xlane.xlu1 %1292 }
 0xd79   : > { %3372 = vrcp.f32 %v1293_v40 }
 0xd7c   : > { %v1188_v42 = vpop.permute.xlu1 %1187 }
 0xd7d   : > { %v1193_v43 = vsel %vm345_vm2, %v1188_v42, 0 }
 0xd7e   : > { %3118 = vmatpush3.bf16.msra.mxu1 %v1193_v43 }
 0xd7f   : > { %3129 = vmatprep.subr.bf16.mxu1 %v3500_v1 }
 0xd81   : > { %3120 = vmatmul.mubr.msk.bf16.vlgmr.msra.gmra.mxu1 %vm281_vm3, %v1186_v45  ;;  %v1464_v45 = vld [vmem:[%s4164_s2 + $0x44] sm:$0xf] }
 0xd82   : > { %3130 = vmatpush3.bf16.msra.mxu1 %v1303_v46  ;;  %3131 = vmatprep.mubr.msk.bf16.mxu1 %vm3501_vm0, %v3500_v1  ;;  %v1465_v46 = vld [vmem:[%s4164_s2 + $0x64] sm:$0xf] }
 0xd83   : > { %3143 = vmatprep.subr.bf16.mxu1 %v3500_v1 }
 0xd86   : > { %v3373_v47 = vpop.eup %3372 }
 0xd87   : > { %v1295_v48 = vmul.f32 %v3373_v47, %v3365_v22  ;;  %v1462_v47 = vld [vmem:[%s4164_s2 + $0x4] sm:$0xf] }
 0xd89   : > { %v1296_v49 = vpack.c.bf16 %v1295_v48, %v1295_v48  ;;  %v2886_v48 = vcombine.low %v1464_v45, %v1465_v46 }
 0xd8b   : > { %3132 = vmatmul.mubr.msk.bf16.vlgmr.msra.gmra.mxu1 %vm281_vm3, %v1296_v49  ;;  %v1463_v49 = vld [vmem:[%s4164_s2 + $0x24] sm:$0xf] }
 0xd8c   : > { %3147 = vmatprep.mubr.msk.bf16.mxu1 %vm3501_vm0, %v3500_v1  ;;  %3144 = vmatpush3.bf16.msra.mxu1 %v2886_v48 }
 0xd8d   : > { %3145 = vmatprep.subr.bf16.mxu1 %v3500_v1 }
 0xe14   : > { %v1009_v50 = vpop.f32.mrf.mxu1 }
 0xe16   : > { %v3097_v51 = vpop.f32.mrf.mxu1 }
 0xe18   : > { %v1012_v36 = vpop.f32.mrf.mxu1 }
 0xe1a   : > { %v3098_v52 = vpop.f32.mrf.mxu1 }
 0xe1c   : > { %v1119_v6 = vpop.f32.mrf.mxu1 }
 0xe1d   : > { %1346 = vrot.lane.b32.xlu1 %v1119_v6, %s4190_s10 }
 0xe1e   : > { %v3109_v53 = vpop.f32.mrf.mxu1 }
 0xe20   : > { %v1122_v54 = vpop.f32.mrf.mxu1 }
 0xe22   : > { %v3110_v55 = vpop.f32.mrf.mxu1 }
 0xe23   : > { %v2884_v55 = vld [vmem:[%s4165_s3 + $0x2] ss:$0 sm:$0xff] }
 0xe41   : > { %v1229_v56 = vpop.f32.mrf.mxu1 }
 0xe42   : > { %1350 = vrot.lane.b32.xlu0 %v1229_v56, %s4191_s11 }
 0xe43   : > { %v3121_v57 = vpop.f32.mrf.mxu1 }
 0xe45   : > { %v1232_v58 = vpop.f32.mrf.mxu1 }
 0xe47   : > { %v3122_v59 = vpop.f32.mrf.mxu1 }
 0xe4b   : > { %v1339_v60 = vpop.f32.mrf.mxu1 }
 0xe4c   : > { %1354 = vrot.lane.b32.xlu1 %v1339_v60, %s4192_s30 }
 0xe4d   : > { %v3133_v61 = vpop.f32.mrf.mxu1 }
 0xe4f   : > { %v1342_v62 = vpop.f32.mrf.mxu1 }
 0xe51   : > { %v3134_v63 = vpop.f32.mrf.mxu1 }
 0xe8f   : > { %v1347_v0 = vpop.permute.xlu1 %1346 }
 0xe90   : > { %v1357_v3 = vsel %vm281_vm3, %v1009_v50, %v1347_v0  ;;  %v2885_v50 = vcombine.low %v1462_v47, %v1463_v49 }
 0xe92   : > { %3146 = vmatpush3.bf16.msra.mxu1 %v2885_v50 }
 0xe93   : > { %3157 = vmatprep.subr.bf16.mxu1 %v3500_v1 }
 0xeb4   : > { %v1351_v2 = vpop.permute.xlu0 %1350 }
 0xeb5   : > { %v1358_v4 = vsel %vm203_vm1, %v1357_v3, %v1351_v2 }
 0xebe   : > { %v1355_v5 = vpop.permute.xlu1 %1354 }
 0xebf   : > { %v1359_v7 = vsel %vm733_vm4, %v1358_v4, %v1355_v5 }
 0xec0   : > { %v1360_v9 = vadd.f32 %v1359_v7, %v3746_v31  ;;  %v1361_v31 = vld [vmem:[%s4164_s2 + $0xc] sm:$0xf] }
 0xec1   : > { %v2880_v19 = vcombine.low %v1361_v31, %v1362_v18 }
 0xec2   : > { %v1366_v10 = vsel %vm741_vm5, %v1360_v9, 0.0 }
 0xec3   : > { %1367 = vadd.xlane.f32.xlu0 %v1366_v10  ;;  %3138 = vmatpush3.bf16.msra.mxu0 %v2880_v19 }
 0xec4   : > { %3151 = vmatprep.subr.bf16.mxu0 %v3500_v1 }
 0xf4c   : > { %v1368_v11 = vpop.xlane.xlu0 %1367 }
 0xf4d   : > { %v1369_v12 = vmul.f32 0.03125, %v1368_v11 }
 0xf4f   : > { %v1370_v13 = vsub.f32 %v1360_v9, %v1369_v12 }
 0xf51   : > { %v1371_v14 = vmul.f32 %v1370_v13, %v1370_v13 }
 0xf53   : > { %v1372_v15 = vsel %vm741_vm5, %v1371_v14, 0.0 }
 0xf54   : > { %1373 = vadd.xlane.f32.xlu1 %v1372_v15 }
 0xfdd   : > { %v1374_v20 = vpop.xlane.xlu1 %1373 }
 0xfde   : > { %v1375_v21 = vmul.f32 0.03125, %v1374_v20 }
 0xfe0   : > { %v1376_v22 = vadd.f32 1e-05, %v1375_v21 }
 0xfe2   : > { %3374 = vrsqrt.f32 %v1376_v22 }
 0xfef   : > { %v3375_v23 = vpop.eup %3374 }
 0xff0   : > { %v1378_v24 = vmul.f32 %v3375_v23, %v1370_v13 }
 0xff2   : > { %v1379_v25 = vpack.c.bf16 %v1378_v24, %v1378_v24 }
 0xff4   : > { %3140 = vmatmul.mubr.msk.bf16.vlgmr.msra.gmra.mxu0 %vm741_vm5, %v1379_v25 }
 0xff5   : > { %3153 = vmatprep.mubr.msk.bf16.mxu0 %vm3501_vm0, %v3500_v1 }
0x10b4   : > { %v1435_v27 = vpop.f32.mrf.mxu0 }
0x10b5   : > { %v1436_v28 = vadd.f32 %v2879_v26, %v1435_v27 }
0x10b6   : > { %v3141_v29 = vpop.f32.mrf.mxu0 }
0x10b7   : > { %v2883_v30 = vmul.f32 -1.442695, %v1436_v28 }
0x10b8   : > { %v1438_v32 = vpop.f32.mrf.mxu0 }
0x10b9   : > { %3376 = vpow2.f32 %v2883_v30 }
0x10ba   : > { %v3142_v34 = vpop.f32.mrf.mxu0 }
0x10c6   : > { %v3377_v35 = vpop.eup %3376 }
0x10c7   : > { %v1444_v37 = vadd.f32 1.0, %v3377_v35 }
0x10c9   : > { %3378 = vrcp.f32 %v1444_v37 }
0x10d6   : > { %v3379_v33 = vpop.eup %3378 }
0x10d7   : > { %v1447_v38 = vadd.f32 %v3379_v33, %v1378_v24 }
0x10d9   : > { %v1448_v39 = vsel %vm741_vm5, %v1447_v38, 0.0 }
0x10da   : > { %1449 = vadd.xlane.f32.xlu0 %v1448_v39 }
0x1163   : > { %v1450_v40 = vpop.xlane.xlu0 %1449 }
0x1164   : > { %v1451_v41 = vmul.f32 0.03125, %v1450_v40 }
0x1166   : > { %v1452_v42 = vsub.f32 %v1447_v38, %v1451_v41 }
0x1168   : > { %v1453_v43 = vmul.f32 %v1452_v42, %v1452_v42 }
0x116a   : > { %v1454_v44 = vsel %vm741_vm5, %v1453_v43, 0.0 }
0x116b   : > { %1455 = vadd.xlane.f32.xlu0 %v1454_v44 }
0x11f4   : > { %v1456_v51 = vpop.xlane.xlu0 %1455 }
0x11f5   : > { %v1457_v36 = vmul.f32 0.03125, %v1456_v51 }
0x11f7   : > { %v1458_v52 = vadd.f32 1e-05, %v1457_v36 }
0x11f9   : > { %3380 = vrsqrt.f32 %v1458_v52 }
0x1206   : > { %v3381_v6 = vpop.eup %3380 }
0x1207   : > { %v1460_v53 = vmul.f32 %v3381_v6, %v1452_v42 }
0x1209   : > { %v1461_v54 = vpack.c.bf16 %v1460_v53, %v1460_v53 }
0x120b   : > { %3148 = vmatmul.mubr.msk.bf16.vlgmr.msra.gmra.mxu1 %vm741_vm5, %v1461_v54 }
0x120c   : > { %3159 = vmatprep.mubr.msk.bf16.mxu1 %vm3501_vm0, %v3500_v1 }
0x12cb   : > { %v1522_v56 = vpop.f32.mrf.mxu1 }
0x12cc   : > { %v3874_v57 = vadd.f32 %v2884_v55, %v1522_v56 }
0x12cd   : > { %v3149_v58 = vpop.f32.mrf.mxu1 }
0x12ce   : > { %v3878_v59 = vpack.c.bf16 %v3874_v57, %v3874_v57 }
0x12cf   : > { %v1525_v60 = vpop.f32.mrf.mxu1 }
0x12d0   : > { %1640 = vrot.lane.b32.xlu0 %v3878_v59, %s4185_s14  ;;  %1530 = vrot.lane.b32.xlu1 %v3878_v59, %s3503_s13 }
0x12d1   : > { %v3150_v61 = vpop.f32.mrf.mxu1 }
0x12d4   : > { %1748 = vrot.lane.b32.xlu0 %v3878_v59, %s3508_s27  ;;  %1638 = vrot.lane.b32.xlu1 %v3878_v59, %s3506_s22 }
0x12d8   : > { %1858 = vrot.lane.b32.xlu0 %v3878_v59, %s4193_s29  ;;  %1750 = vrot.lane.b32.xlu1 %v3878_v59, %s4194_s5 }
0x12dc   : > { %1860 = vrot.lane.b32.xlu1 %v3878_v59, %s4195_s6 }
0x1342   : > { %v1531_v62 = vpop.permute.xlu1 %1530  ;;  %v1641_v0 = vpop.permute.xlu0 %1640 }
0x1343   : > { %v1536_v63 = vsel %vm281_vm3, %v1531_v62, 0  ;;  %v1646_v3 = vsel %vm281_vm3, %v1641_v0, 0 }
0x1344   : > { %3152 = vmatpush3.bf16.xpose.msra.mxu0 %v1536_v63 }
0x1345   : > { %3163 = vmatprep.subr.bf16.mxu0 %v3500_v1 }
0x1346   : > { %v1639_v2 = vpop.permute.xlu1 %1638  ;;  %v1749_v9 = vpop.permute.xlu0 %1748 }
0x134a   : > { %v1751_v4 = vpop.permute.xlu1 %1750  ;;  %v1859_v11 = vpop.permute.xlu0 %1858 }
0x134b   : > { %3154 = vmatmul.mubr.msk.bf16.vlgmr.msra.gmra.mxu0 %vm281_vm3, %v3878_v59  ;;  %v1756_v5 = vsel %vm281_vm3, %v1751_v4, 0 }
0x134c   : > { %3164 = vmatpush3.bf16.xpose.msra.mxu0 %v1646_v3  ;;  %3165 = vmatprep.mubr.msk.bf16.mxu0 %vm3501_vm0, %v3500_v1 }
0x134d   : > { %3175 = vmatprep.subr.bf16.mxu0 %v3500_v1 }
0x134e   : > { %v1861_v7 = vpop.permute.xlu1 %1860 }
0x134f   : > { %v1866_v10 = vsel %vm281_vm3, %v1861_v7, 0 }
0x1353   : > { %3166 = vmatmul.mubr.msk.bf16.vlgmr.msra.gmra.mxu0 %vm281_vm3, %v1639_v2 }
0x1354   : > { %3176 = vmatpush3.bf16.xpose.msra.mxu0 %v1756_v5  ;;  %3177 = vmatprep.mubr.msk.bf16.mxu0 %vm3501_vm0, %v3500_v1 }
0x1355   : > { %3187 = vmatprep.subr.bf16.mxu0 %v3500_v1 }
0x135b   : > { %3178 = vmatmul.mubr.msk.bf16.vlgmr.msra.gmra.mxu0 %vm281_vm3, %v1749_v9 }
0x135c   : > { %3188 = vmatpush3.bf16.xpose.msra.mxu0 %v1866_v10  ;;  %3189 = vmatprep.mubr.msk.bf16.mxu0 %vm3501_vm0, %v3500_v1 }
0x135d   : > { %3199 = vmatprep.subr.bf16.mxu0 %v3500_v1 }
0x1363   : > { %3190 = vmatmul.mubr.msk.bf16.vlgmr.msra.gmra.mxu0 %vm281_vm3, %v1859_v11 }
0x1364   : > { %3203 = vmatprep.mubr.msk.bf16.mxu0 %vm3501_vm0, %v3500_v1 }
0x140b   : > { %v1572_v12 = vpop.f32.mrf.mxu0 }
0x140c   : > { %v1578_v13 = vsel %vm281_vm3, %v1572_v12, -inf }
0x140d   : > { %1579 = vmax.xlane.f32.xlu1 %v1578_v13  ;;  %v3155_v14 = vpop.f32.mrf.mxu0 }
0x140f   : > { %v1575_v15 = vpop.f32.mrf.mxu0 }
0x1411   : > { %v3156_v16 = vpop.f32.mrf.mxu0 }
0x1413   : > { %v1682_v8 = vpop.f32.mrf.mxu0 }
0x1414   : > { %v1688_v31 = vsel %vm281_vm3, %v1682_v8, -inf }
0x1415   : > { %1689 = vmax.xlane.f32.xlu0 %v1688_v31  ;;  %v3167_v17 = vpop.f32.mrf.mxu0 }
0x1417   : > { %v1685_v18 = vpop.f32.mrf.mxu0 }
0x1419   : > { %v3168_v19 = vpop.f32.mrf.mxu0 }
0x141b   : > { %v1792_v20 = vpop.f32.mrf.mxu0 }
0x141c   : > { %v1798_v21 = vsel %vm281_vm3, %v1792_v20, -inf }
0x141d   : > { %1799 = vmax.xlane.f32.xlu0 %v1798_v21  ;;  %v3179_v22 = vpop.f32.mrf.mxu0 }
0x141f   : > { %v1795_v23 = vpop.f32.mrf.mxu0 }
0x1421   : > { %v3180_v24 = vpop.f32.mrf.mxu0 }
0x1423   : > { %v1902_v25 = vpop.f32.mrf.mxu0 }
0x1424   : > { %v1908_v26 = vsel %vm281_vm3, %v1902_v25, -inf }
0x1425   : > { %1909 = vmax.xlane.f32.xlu1 %v1908_v26  ;;  %v3191_v27 = vpop.f32.mrf.mxu0 }
0x1427   : > { %v1905_v28 = vpop.f32.mrf.mxu0 }
0x1429   : > { %v3192_v29 = vpop.f32.mrf.mxu0 }
0x1496   : > { %v1580_v30 = vpop.xlane.xlu1 %1579 }
0x1497   : > { %v1581_v32 = vsub.f32 %v1572_v12, %v1580_v30 }
0x1499   : > { %v1582_v34 = vmul.f32 1.442695, %v1581_v32 }
0x149b   : > { %3382 = vpow2.f32 %v1582_v34 }
0x149e   : > { %v1690_v35 = vpop.xlane.xlu0 %1689 }
0x149f   : > { %v1691_v37 = vsub.f32 %v1682_v8, %v1690_v35 }
0x14a1   : > { %v1692_v33 = vmul.f32 1.442695, %v1691_v37 }
0x14a3   : > { %3384 = vpow2.f32 %v1692_v33 }
0x14a6   : > { %v1800_v38 = vpop.xlane.xlu0 %1799 }
0x14a7   : > { %v1801_v39 = vsub.f32 %v1792_v20, %v1800_v38 }
0x14a8   : > { %v3383_v40 = vpop.eup %3382 }
0x14a9   : > { %v1802_v41 = vmul.f32 1.442695, %v1801_v39  ;;  %v1584_v42 = vsel %vm281_vm3, %v3383_v40, 0.0 }
0x14aa   : > { %1585 = vadd.xlane.f32.xlu0 %v1584_v42 }
0x14ab   : > { %3386 = vpow2.f32 %v1802_v41 }
0x14ae   : > { %v1910_v47 = vpop.xlane.xlu1 %1909 }
0x14af   : > { %v1911_v48 = vsub.f32 %v1902_v25, %v1910_v47 }
0x14b0   : > { %v3385_v43 = vpop.eup %3384 }
0x14b1   : > { %v1694_v44 = vsel %vm281_vm3, %v3385_v43, 0.0  ;;  %v1912_v49 = vmul.f32 1.442695, %v1911_v48 }
0x14b2   : > { %1695 = vadd.xlane.f32.xlu1 %v1694_v44  ;;  %v1987_v44 = vld [vmem:[%s4164_s2 + $0x70] sm:$0xf] }
0x14b3   : > { %3388 = vpow2.f32 %v1912_v49 }
0x14b8   : > { %v3387_v45 = vpop.eup %3386 }
0x14b9   : > { %v1804_v46 = vsel %vm281_vm3, %v3387_v45, 0.0 }
0x14ba   : > { %1805 = vadd.xlane.f32.xlu0 %v1804_v46  ;;  %v1985_v46 = vld [vmem:[%s4164_s2 + $0x30] sm:$0xf] }
0x14c0   : > { %v3389_v50 = vpop.eup %3388 }
0x14c1   : > { %v1914_v51 = vsel %vm281_vm3, %v3389_v50, 0.0 }
0x14c3   : > { %1700 = vrot.lane.b32.xlu1 %v3878_v59, %s4196_s7 }
0x14d0   : > { %1590 = vrot.lane.b32.xlu0 %v3878_v59, %s4197_s12 }
0x14d4   : > { %1920 = vrot.lane.b32.xlu0 %v3878_v59, %s4188_s8 }
0x14e7   : > { %1915 = vadd.xlane.f32.xlu1 %v1914_v51 }
0x14f8   : > { %1810 = vrot.lane.b32.xlu1 %v3878_v59, %s4189_s9  ;;  %s3516_s9 = smov [#allocation2]  }
0x14f9   : > { %s3442_s20 = sshll.u32 %s3516_s9, 4  ;;  %s3443_s20 = int_to_ptr.vmem [resolvable:$false] %s3442_s20 }
0x1533   : > { %v1586_v36 = vpop.xlane.xlu0 %1585 }
0x1534   : > { %3390 = vrcp.f32 %v1586_v36 }
0x153b   : > { %v1696_v52 = vpop.xlane.xlu1 %1695 }
0x153c   : > { %3392 = vrcp.f32 %v1696_v52 }
0x153f   : > { %v1701_v58 = vpop.permute.xlu1 %1700 }
0x1540   : > { %v1706_v62 = vsel %vm345_vm2, %v1701_v58, 0 }
0x1541   : > { %v3391_v6 = vpop.eup %3390 }
0x1542   : > { %v1588_v54 = vmul.f32 %v3391_v6, %v3383_v40  ;;  %v2896_v6 = vld [vmem:[%s4165_s3 + $0x5] ss:$0 sm:$0xff] }
0x1543   : > { %v1806_v53 = vpop.xlane.xlu0 %1805 }
0x1544   : > { %v1589_v60 = vpack.c.bf16 %v1588_v54, %v1588_v54  ;;  %3394 = vrcp.f32 %v1806_v53 }
0x1547   : > { %v1591_v55 = vpop.permute.xlu0 %1590 }
0x1548   : > { %v1596_v56 = vsel %vm345_vm2, %v1591_v55, 0 }
0x1549   : > { %3158 = vmatpush3.bf16.msra.mxu1 %v1596_v56  ;;  %v3393_v61 = vpop.eup %3392 }
0x154a   : > { %3169 = vmatprep.subr.bf16.mxu1 %v3500_v1  ;;  %v1698_v59 = vmul.f32 %v3393_v61, %v3385_v43  ;;  %v1986_v43 = vld [vmem:[%s4164_s2 + $0x50] sm:$0xf] }
0x154b   : > { %v1921_v7 = vpop.permute.xlu0 %1920 }
0x154c   : > { %3160 = vmatmul.mubr.msk.bf16.vlgmr.msra.gmra.mxu1 %vm281_vm3, %v1589_v60  ;;  %v1699_v63 = vpack.c.bf16 %v1698_v59, %v1698_v59  ;;  %v1926_v10 = vsel %vm345_vm2, %v1921_v7, 0 }
0x154d   : > { %3170 = vmatpush3.bf16.msra.mxu1 %v1706_v62  ;;  %3171 = vmatprep.mubr.msk.bf16.mxu1 %vm3501_vm0, %v3500_v1 }
0x154e   : > { %3181 = vmatprep.subr.bf16.mxu1 %v3500_v1 }
0x1551   : > { %v3395_v0 = vpop.eup %3394 }
0x1552   : > { %v1808_v3 = vmul.f32 %v3395_v0, %v3387_v45  ;;  %v2898_v45 = vcombine.low %v1986_v43, %v1987_v44 }
0x1554   : > { %3172 = vmatmul.mubr.msk.bf16.vlgmr.msra.gmra.mxu1 %vm281_vm3, %v1699_v63  ;;  %v1809_v9 = vpack.c.bf16 %v1808_v3, %v1808_v3  ;;  %3200 = vmatpush3.bf16.msra.mxu0 %v2898_v45 }
0x1555   : > { %3183 = vmatprep.mubr.msk.bf16.mxu1 %vm3501_vm0, %v3500_v1  ;;  %3201 = vmatprep.subr.bf16.mxu0 %v3500_v1 }
0x1570   : > { %v1916_v2 = vpop.xlane.xlu1 %1915 }
0x1571   : > { %3396 = vrcp.f32 %v1916_v2 }
0x1574   : > { %v1811_v4 = vpop.permute.xlu1 %1810 }
0x1575   : > { %v1816_v5 = vsel %vm345_vm2, %v1811_v4, 0 }
0x1576   : > { %3182 = vmatpush3.bf16.msra.mxu1 %v1816_v5 }
0x1577   : > { %3193 = vmatprep.subr.bf16.mxu1 %v3500_v1 }
0x1579   : > { %3184 = vmatmul.mubr.msk.bf16.vlgmr.msra.gmra.mxu1 %vm281_vm3, %v1809_v9  ;;  %v2093_v9 = vld [vmem:[%s4164_s2 + $0x54] sm:$0xf] }
0x157a   : > { %3194 = vmatpush3.bf16.msra.mxu1 %v1926_v10  ;;  %3195 = vmatprep.mubr.msk.bf16.mxu1 %vm3501_vm0, %v3500_v1  ;;  %v2094_v10 = vld [vmem:[%s4164_s2 + $0x74] sm:$0xf] }
0x157b   : > { %3207 = vmatprep.subr.bf16.mxu1 %v3500_v1 }
0x157e   : > { %v3397_v11 = vpop.eup %3396 }
0x157f   : > { %v1918_v12 = vmul.f32 %v3397_v11, %v3389_v50  ;;  %v2091_v11 = vld [vmem:[%s4164_s2 + $0x14] sm:$0xf] }
0x1581   : > { %v1919_v13 = vpack.c.bf16 %v1918_v12, %v1918_v12  ;;  %v2904_v12 = vcombine.low %v2093_v9, %v2094_v10 }
0x1583   : > { %3196 = vmatmul.mubr.msk.bf16.vlgmr.msra.gmra.mxu1 %vm281_vm3, %v1919_v13  ;;  %v2092_v13 = vld [vmem:[%s4164_s2 + $0x34] sm:$0xf] }
0x1584   : > { %3211 = vmatprep.mubr.msk.bf16.mxu1 %vm3501_vm0, %v3500_v1  ;;  %3208 = vmatpush3.bf16.msra.mxu1 %v2904_v12 }
0x1585   : > { %3209 = vmatprep.subr.bf16.mxu1 %v3500_v1 }
0x160c   : > { %v1632_v14 = vpop.f32.mrf.mxu1 }
0x160e   : > { %v3161_v15 = vpop.f32.mrf.mxu1 }
0x1610   : > { %v1635_v16 = vpop.f32.mrf.mxu1 }
0x1612   : > { %v3162_v8 = vpop.f32.mrf.mxu1 }
0x1614   : > { %v1742_v31 = vpop.f32.mrf.mxu1 }
0x1615   : > { %1969 = vrot.lane.b32.xlu1 %v1742_v31, %s4190_s10 }
0x1616   : > { %v3173_v17 = vpop.f32.mrf.mxu1 }
0x1618   : > { %v1745_v18 = vpop.f32.mrf.mxu1 }
0x161a   : > { %v3174_v19 = vpop.f32.mrf.mxu1 }
0x1639   : > { %v1852_v20 = vpop.f32.mrf.mxu1 }
0x163a   : > { %1973 = vrot.lane.b32.xlu0 %v1852_v20, %s4191_s11 }
0x163b   : > { %v3185_v21 = vpop.f32.mrf.mxu1 }
0x163d   : > { %v1855_v22 = vpop.f32.mrf.mxu1 }
0x163f   : > { %v3186_v23 = vpop.f32.mrf.mxu1 }
0x1640   : > { %v4002_v23 = vld [vmem:[%s4165_s3 + $0x6] sm:$0x1] }
0x1643   : > { %v1962_v24 = vpop.f32.mrf.mxu1 }
0x1644   : > { %1977 = vrot.lane.b32.xlu1 %v1962_v24, %s4192_s30  ;;  %v2158_v24 = vpack.c.bf16 %v4002_v23, %v4002_v23 }
0x1645   : > { %v3197_v25 = vpop.f32.mrf.mxu1 }
0x1646   : > { %v2902_v25 = vld [vmem:[%s4165_s3 + $0x7] ss:$0 sm:$0xff] }
0x1647   : > { %v1965_v26 = vpop.f32.mrf.mxu1 }
0x1649   : > { %v3198_v27 = vpop.f32.mrf.mxu1 }
0x1687   : > { %v1970_v28 = vpop.permute.xlu1 %1969 }
0x1688   : > { %v1980_v30 = vsel %vm281_vm3, %v1632_v14, %v1970_v28  ;;  %v2903_v14 = vcombine.low %v2091_v11, %v2092_v13 }
0x168a   : > { %3210 = vmatpush3.bf16.msra.mxu1 %v2903_v14 }
0x168b   : > { %3221 = vmatprep.subr.bf16.mxu1 %v3500_v1 }
0x16ac   : > { %v1974_v29 = vpop.permute.xlu0 %1973 }
0x16ad   : > { %v1981_v32 = vsel %vm203_vm1, %v1980_v30, %v1974_v29 }
0x16b6   : > { %v1978_v34 = vpop.permute.xlu1 %1977 }
0x16b7   : > { %v1982_v35 = vsel %vm733_vm4, %v1981_v32, %v1978_v34 }
0x16b8   : > { %v1983_v37 = vadd.f32 %v1982_v35, %v3874_v57  ;;  %v1984_v57 = vld [vmem:[%s4164_s2 + $0x10] sm:$0xf] }
0x16b9   : > { %v2897_v47 = vcombine.low %v1984_v57, %v1985_v46 }
0x16ba   : > { %v1989_v33 = vsel %vm741_vm5, %v1983_v37, 0.0 }
0x16bb   : > { %1990 = vadd.xlane.f32.xlu0 %v1989_v33  ;;  %3202 = vmatpush3.bf16.msra.mxu0 %v2897_v47 }
0x16bc   : > { %3215 = vmatprep.subr.bf16.mxu0 %v3500_v1 }
0x1744   : > { %v1991_v38 = vpop.xlane.xlu0 %1990 }
0x1745   : > { %v1992_v39 = vmul.f32 0.03125, %v1991_v38 }
0x1747   : > { %v1993_v40 = vsub.f32 %v1983_v37, %v1992_v39 }
0x1749   : > { %v1994_v41 = vmul.f32 %v1993_v40, %v1993_v40 }
0x174b   : > { %v1995_v42 = vsel %vm741_vm5, %v1994_v41, 0.0 }
0x174c   : > { %1996 = vadd.xlane.f32.xlu1 %v1995_v42 }
0x17d5   : > { %v1997_v48 = vpop.xlane.xlu1 %1996 }
0x17d6   : > { %v1998_v49 = vmul.f32 0.03125, %v1997_v48 }
0x17d8   : > { %v1999_v50 = vadd.f32 1e-05, %v1998_v49 }
0x17da   : > { %3398 = vrsqrt.f32 %v1999_v50 }
0x17e7   : > { %v3399_v51 = vpop.eup %3398 }
0x17e8   : > { %v2001_v36 = vmul.f32 %v3399_v51, %v1993_v40 }
0x17ea   : > { %v2002_v52 = vpack.c.bf16 %v2001_v36, %v2001_v36 }
0x17ec   : > { %3204 = vmatmul.mubr.msk.bf16.vlgmr.msra.gmra.mxu0 %vm741_vm5, %v2002_v52 }
0x17ed   : > { %3217 = vmatprep.mubr.msk.bf16.mxu0 %vm3501_vm0, %v3500_v1 }
0x18ac   : > { %v2058_v53 = vpop.f32.mrf.mxu0 }
0x18ad   : > { %v2059_v54 = vadd.f32 %v2896_v6, %v2058_v53 }
0x18ae   : > { %v3205_v55 = vpop.f32.mrf.mxu0 }
0x18af   : > { %v2900_v56 = vmul.f32 -1.442695, %v2059_v54 }
0x18b0   : > { %v2061_v58 = vpop.f32.mrf.mxu0 }
0x18b1   : > { %3400 = vpow2.f32 %v2900_v56 }
0x18b2   : > { %v3206_v60 = vpop.f32.mrf.mxu0 }
0x18be   : > { %v3401_v61 = vpop.eup %3400 }
0x18bf   : > { %v2067_v62 = vadd.f32 1.0, %v3401_v61 }
0x18c1   : > { %3402 = vrcp.f32 %v2067_v62 }
0x18ce   : > { %v3403_v59 = vpop.eup %3402 }
0x18cf   : > { %v2070_v63 = vadd.f32 %v3403_v59, %v2001_v36 }
0x18d1   : > { %v2071_v0 = vsel %vm741_vm5, %v2070_v63, 0.0 }
0x18d2   : > { %2072 = vadd.xlane.f32.xlu0 %v2071_v0 }
0x195b   : > { %v2073_v2 = vpop.xlane.xlu0 %2072 }
0x195c   : > { %v2074_v3 = vmul.f32 0.03125, %v2073_v2 }
0x195e   : > { %v2075_v4 = vsub.f32 %v2070_v63, %v2074_v3 }
0x1960   : > { %v2076_v5 = vmul.f32 %v2075_v4, %v2075_v4 }
0x1962   : > { %v2077_v7 = vsel %vm741_vm5, %v2076_v5, 0.0 }
0x1963   : > { %2078 = vadd.xlane.f32.xlu0 %v2077_v7 }
0x1979   : > { %2269 = vrot.lane.b32.xlu0 %v2158_v24, %s3506_s22 }
0x19ec   : > { %v2079_v15 = vpop.xlane.xlu0 %2078 }
0x19ed   : > { %v2080_v16 = vmul.f32 0.03125, %v2079_v15 }
0x19ef   : > { %v2081_v8 = vadd.f32 1e-05, %v2080_v16 }
0x19f0   : > { %v2270_v38 = vpop.permute.xlu0 %2269 }
0x19f1   : > { %3404 = vrsqrt.f32 %v2081_v8 }
0x19fe   : > { %v3405_v31 = vpop.eup %3404 }
0x19ff   : > { %v2083_v17 = vmul.f32 %v3405_v31, %v2075_v4 }
0x1a01   : > { %v2901_v18 = vmul.f32 -1.442695, %v2083_v17 }
0x1a03   : > { %3406 = vpow2.f32 %v2901_v18 }
0x1a10   : > { %v3407_v19 = vpop.eup %3406 }
0x1a11   : > { %v2087_v20 = vadd.f32 1.0, %v3407_v19 }
0x1a13   : > { %3408 = vrcp.f32 %v2087_v20 }
0x1a20   : > { %v3409_v21 = vpop.eup %3408 }
0x1a21   : > { %v2090_v22 = vpack.c.bf16 %v3409_v21, %v3409_v21 }
0x1a23   : > { %3212 = vmatmul.mubr.msk.bf16.vlgmr.msra.gmra.mxu1 %vm741_vm5, %v2090_v22 }
0x1a24   : > { %3223 = vmatprep.mubr.msk.bf16.mxu1 %vm3501_vm0, %v3500_v1 }
0x1ae3   : > { %v2151_v26 = vpop.f32.mrf.mxu1 }
0x1ae4   : > { %v2152_v27 = vadd.f32 %v2902_v25, %v2151_v26 }
0x1ae5   : > { %v3213_v28 = vpop.f32.mrf.mxu1 }
0x1ae6   : > { %v4010_v29 = vpack.c.bf16 %v2152_v27, %v2152_v27 }
0x1ae7   : > { %v2154_v30 = vpop.f32.mrf.mxu1 }
0x1ae8   : > { %2491 = vrot.lane.b32.xlu0 %v4010_v29, %s4193_s29  ;;  %2271 = vrot.lane.b32.xlu1 %v4010_v29, %s3506_s22  ;;  %v2164_v32 = vsel %vm281_vm3, %v4010_v29, 0 }
0x1ae9   : > { %v3214_v34 = vpop.f32.mrf.mxu1  ;;  %3216 = vmatpush3.bf16.xpose.msra.mxu0 %v2164_v32 }
0x1aea   : > { %3227 = vmatprep.subr.bf16.mxu0 %v3500_v1 }
0x1aec   : > { %2381 = vrot.lane.b32.xlu1 %v4010_v29, %s3508_s27 }
0x1af0   : > { %3218 = vmatmul.mubr.msk.bf16.vlgmr.msra.gmra.mxu0 %vm281_vm3, %v2158_v24  ;;  %2379 = vrot.lane.b32.xlu1 %v2158_v24, %s3508_s27 }
0x1af1   : > { %3229 = vmatprep.mubr.msk.bf16.mxu0 %vm3501_vm0, %v3500_v1 }
0x1af4   : > { %2489 = vrot.lane.b32.xlu1 %v2158_v24, %s4193_s29 }
0x1b5a   : > { %v2272_v35 = vpop.permute.xlu1 %2271  ;;  %v2492_v40 = vpop.permute.xlu0 %2491 }
0x1b5b   : > { %v2277_v37 = vsel %vm281_vm3, %v2272_v35, 0  ;;  %v2497_v42 = vsel %vm281_vm3, %v2492_v40, 0 }
0x1b5c   : > { %3228 = vmatpush3.bf16.xpose.msra.mxu0 %v2277_v37 }
0x1b5d   : > { %3239 = vmatprep.subr.bf16.mxu0 %v3500_v1 }
0x1b5e   : > { %v2382_v33 = vpop.permute.xlu1 %2381 }
0x1b5f   : > { %v2387_v39 = vsel %vm281_vm3, %v2382_v33, 0 }
0x1b62   : > { %v2380_v41 = vpop.permute.xlu1 %2379 }
0x1b63   : > { %3230 = vmatmul.mubr.msk.bf16.vlgmr.msra.gmra.mxu0 %vm281_vm3, %v2270_v38 }
0x1b64   : > { %3240 = vmatpush3.bf16.xpose.msra.mxu0 %v2387_v39  ;;  %3241 = vmatprep.mubr.msk.bf16.mxu0 %vm3501_vm0, %v3500_v1 }
0x1b65   : > { %3251 = vmatprep.subr.bf16.mxu0 %v3500_v1 }
0x1b66   : > { %v2490_v43 = vpop.permute.xlu1 %2489 }
0x1b6b   : > { %3242 = vmatmul.mubr.msk.bf16.vlgmr.msra.gmra.mxu0 %vm281_vm3, %v2380_v41 }
0x1b6c   : > { %3252 = vmatpush3.bf16.xpose.msra.mxu0 %v2497_v42  ;;  %3253 = vmatprep.mubr.msk.bf16.mxu0 %vm3501_vm0, %v3500_v1 }
0x1b6d   : > { %3263 = vmatprep.subr.bf16.mxu0 %v3500_v1 }
0x1b73   : > { %3254 = vmatmul.mubr.msk.bf16.vlgmr.msra.gmra.mxu0 %vm281_vm3, %v2490_v43 }
0x1b74   : > { %3267 = vmatprep.mubr.msk.bf16.mxu0 %vm3501_vm0, %v3500_v1 }
0x1bb0   : > { %v2200_v44 = vpop.f32.mrf.mxu0 }
0x1bb1   : > { %v2207_v57 = vsel %vm2206_vm6, %v2200_v44, -inf }
0x1bb2   : > { %2208 = vmax.xlane.f32.xlu0 %v2207_v57  ;;  %v3219_v45 = vpop.f32.mrf.mxu0 }
0x1bb4   : > { %v2203_v46 = vpop.f32.mrf.mxu0 }
0x1bb6   : > { %v3220_v47 = vpop.f32.mrf.mxu0 }
0x1c23   : > { %v2313_v48 = vpop.f32.mrf.mxu0 }
0x1c24   : > { %v2319_v49 = vsel %vm2206_vm6, %v2313_v48, -inf }
0x1c25   : > { %2320 = vmax.xlane.f32.xlu1 %v2319_v49  ;;  %v3231_v50 = vpop.f32.mrf.mxu0 }
0x1c27   : > { %v2316_v51 = vpop.f32.mrf.mxu0 }
0x1c29   : > { %v3232_v36 = vpop.f32.mrf.mxu0 }
0x1c2b   : > { %v2423_v52 = vpop.f32.mrf.mxu0 }
0x1c2c   : > { %v2429_v6 = vsel %vm2206_vm6, %v2423_v52, -inf }
0x1c2d   : > { %2430 = vmax.xlane.f32.xlu0 %v2429_v6  ;;  %v3243_v53 = vpop.f32.mrf.mxu0 }
0x1c2f   : > { %v2426_v54 = vpop.f32.mrf.mxu0 }
0x1c31   : > { %v3244_v55 = vpop.f32.mrf.mxu0 }
0x1c33   : > { %v2533_v56 = vpop.f32.mrf.mxu0 }
0x1c34   : > { %v2539_v58 = vsel %vm2206_vm6, %v2533_v56, -inf }
0x1c35   : > { %2540 = vmax.xlane.f32.xlu0 %v2539_v58  ;;  %v3255_v60 = vpop.f32.mrf.mxu0 }
0x1c37   : > { %v2536_v61 = vpop.f32.mrf.mxu0 }
0x1c39   : > { %v3256_v62 = vpop.f32.mrf.mxu0 }
0x1c3b   : > { %v2209_v59 = vpop.xlane.xlu0 %2208 }
0x1c3c   : > { %v2210_v63 = vsub.f32 %v2200_v44, %v2209_v59 }
0x1c3e   : > { %v2211_v0 = vmul.f32 1.442695, %v2210_v63 }
0x1c40   : > { %3410 = vpow2.f32 %v2211_v0 }
0x1c4d   : > { %v3411_v2 = vpop.eup %3410 }
0x1c4e   : > { %v2213_v3 = vsel %vm2206_vm6, %v3411_v2, 0.0 }
0x1c4f   : > { %2214 = vadd.xlane.f32.xlu1 %v2213_v3 }
0x1c60   : > { %2220 = vrot.lane.b32.xlu1 %v4010_v29, %s3503_s13  ;;  %s4198_s13 = smov 88  }
0x1cae   : > { %v2321_v4 = vpop.xlane.xlu1 %2320 }
0x1caf   : > { %v2322_v5 = vsub.f32 %v2313_v48, %v2321_v4 }
0x1cb1   : > { %v2323_v7 = vmul.f32 1.442695, %v2322_v5 }
0x1cb3   : > { %3412 = vpow2.f32 %v2323_v7 }
0x1cb6   : > { %v2431_v9 = vpop.xlane.xlu0 %2430 }
0x1cb7   : > { %v2432_v10 = vsub.f32 %v2423_v52, %v2431_v9 }
0x1cb9   : > { %v2433_v11 = vmul.f32 1.442695, %v2432_v10 }
0x1cbb   : > { %3414 = vpow2.f32 %v2433_v11 }
0x1cbe   : > { %v2541_v12 = vpop.xlane.xlu0 %2540 }
0x1cbf   : > { %v2542_v13 = vsub.f32 %v2533_v56, %v2541_v12  ;;  %v2617_v12 = vld [vmem:[%s4164_s2 + $0x58] sm:$0xf] }
0x1cc0   : > { %v3413_v14 = vpop.eup %3412 }
0x1cc1   : > { %v2543_v15 = vmul.f32 1.442695, %v2542_v13  ;;  %v2325_v16 = vsel %vm2206_vm6, %v3413_v14, 0.0  ;;  %v2618_v13 = vld [vmem:[%s4164_s2 + $0x78] sm:$0xf] }
0x1cc2   : > { %2326 = vadd.xlane.f32.xlu0 %v2325_v16 }
0x1cc3   : > { %3416 = vpow2.f32 %v2543_v15  ;;  %v2616_v15 = vld [vmem:[%s4164_s2 + $0x38] sm:$0xf] }
0x1cc8   : > { %v3415_v8 = vpop.eup %3414 }
0x1cc9   : > { %v2435_v31 = vsel %vm2206_vm6, %v3415_v8, 0.0 }
0x1cca   : > { %2436 = vadd.xlane.f32.xlu1 %v2435_v31 }
0x1cd0   : > { %v3417_v17 = vpop.eup %3416 }
0x1cd1   : > { %v2545_v18 = vsel %vm2206_vm6, %v3417_v17, 0.0 }
0x1cd2   : > { %2546 = vadd.xlane.f32.xlu0 %v2545_v18 }
0x1cd8   : > { %v2215_v19 = vpop.xlane.xlu1 %2214 }
0x1cd9   : > { %3418 = vrcp.f32 %v2215_v19 }
0x1cdb   : > { %2441 = vrot.lane.b32.xlu1 %v4010_v29, %s4194_s5 }
0x1cdc   : > { %v2221_v20 = vpop.permute.xlu1 %2220 }
0x1cdd   : > { %v2226_v21 = vsel %vm345_vm2, %v2221_v20, 0 }
0x1cde   : > { %3222 = vmatpush3.bf16.msra.mxu1 %v2226_v21  ;;  %v2619_v21 = vld [vmem:[%s4165_s3 + $0x8] sm:$0x1] }
0x1cdf   : > { %2551 = vrot.lane.b32.xlu1 %v4010_v29, %s4195_s6  ;;  %3233 = vmatprep.subr.bf16.mxu1 %v3500_v1 }
0x1ce6   : > { %v3419_v22 = vpop.eup %3418 }
0x1ce7   : > { %v2217_v24 = vmul.f32 %v3419_v22, %v3411_v2 }
0x1ce8   : > { %2331 = vrot.lane.b32.xlu0 %v4010_v29, %s4198_s13 }
0x1ce9   : > { %v2218_v25 = vpack.c.bf16 %v2217_v24, %v2217_v24 }
0x1ceb   : > { %3224 = vmatmul.mubr.msk.bf16.vlgmr.msra.gmra.mxu1 %vm281_vm3, %v2218_v25 }
0x1cec   : > { %3235 = vmatprep.mubr.msk.bf16.mxu1 %vm3501_vm0, %v3500_v1 }
0x1d4b   : > { %v2327_v26 = vpop.xlane.xlu0 %2326 }
0x1d4c   : > { %3420 = vrcp.f32 %v2327_v26 }
0x1d53   : > { %v2437_v27 = vpop.xlane.xlu1 %2436 }
0x1d54   : > { %3422 = vrcp.f32 %v2437_v27 }
0x1d57   : > { %v2442_v37 = vpop.permute.xlu1 %2441 }
0x1d58   : > { %v2447_v38 = vsel %vm345_vm2, %v2442_v37, 0 }
0x1d59   : > { %v3421_v28 = vpop.eup %3420 }
0x1d5a   : > { %v2329_v32 = vmul.f32 %v3421_v28, %v3413_v14  ;;  %v2915_v14 = vcombine.low %v2617_v12, %v2618_v13 }
0x1d5b   : > { %v2547_v30 = vpop.xlane.xlu0 %2546  ;;  %v2552_v40 = vpop.permute.xlu1 %2551 }
0x1d5c   : > { %3424 = vrcp.f32 %v2547_v30  ;;  %v2330_v29 = vpack.c.bf16 %v2329_v32, %v2329_v32  ;;  %v2557_v43 = vsel %vm345_vm2, %v2552_v40, 0  ;;  %3264 = vmatpush3.bf16.msra.mxu0 %v2915_v14 }
0x1d5d   : > { %3265 = vmatprep.subr.bf16.mxu0 %v3500_v1 }
0x1d5f   : > { %v2332_v34 = vpop.permute.xlu0 %2331 }
0x1d60   : > { %v2337_v35 = vsel %vm345_vm2, %v2332_v34, 0 }
0x1d61   : > { %3234 = vmatpush3.bf16.msra.mxu1 %v2337_v35  ;;  %v3423_v33 = vpop.eup %3422 }
0x1d62   : > { %3245 = vmatprep.subr.bf16.mxu1 %v3500_v1  ;;  %v2439_v39 = vmul.f32 %v3423_v33, %v3415_v8 }
0x1d64   : > { %3236 = vmatmul.mubr.msk.bf16.vlgmr.msra.gmra.mxu1 %vm281_vm3, %v2330_v29  ;;  %v2440_v41 = vpack.c.bf16 %v2439_v39, %v2439_v39 }
0x1d65   : > { %3246 = vmatpush3.bf16.msra.mxu1 %v2447_v38  ;;  %3247 = vmatprep.mubr.msk.bf16.mxu1 %vm3501_vm0, %v3500_v1 }
0x1d66   : > { %3257 = vmatprep.subr.bf16.mxu1 %v3500_v1 }
0x1d69   : > { %v3425_v42 = vpop.eup %3424 }
0x1d6a   : > { %v2549_v44 = vmul.f32 %v3425_v42, %v3417_v17  ;;  %v2714_v42 = vld [vmem:[%s4164_s2 + $0x7c] sm:$0xf] }
0x1d6c   : > { %3248 = vmatmul.mubr.msk.bf16.vlgmr.msra.gmra.mxu1 %vm281_vm3, %v2440_v41  ;;  %v2550_v57 = vpack.c.bf16 %v2549_v44, %v2549_v44  ;;  %v2713_v41 = vld [vmem:[%s4164_s2 + $0x5c] sm:$0xf] }
0x1d6d   : > { %3258 = vmatpush3.bf16.msra.mxu1 %v2557_v43  ;;  %3259 = vmatprep.mubr.msk.bf16.mxu1 %vm3501_vm0, %v3500_v1  ;;  %v2711_v43 = vld [vmem:[%s4164_s2 + $0x1c] sm:$0xf]  ;;  %v2919_v44 = vcombine.low %v2713_v41, %v2714_v42 }
0x1d6e   : > { %3271 = vmatprep.subr.bf16.mxu1 %v3500_v1 }
0x1d74   : > { %3260 = vmatmul.mubr.msk.bf16.vlgmr.msra.gmra.mxu1 %vm281_vm3, %v2550_v57  ;;  %v2712_v57 = vld [vmem:[%s4164_s2 + $0x3c] sm:$0xf] }
0x1d75   : > { %3275 = vmatprep.mubr.msk.bf16.mxu1 %vm3501_vm0, %v3500_v1  ;;  %3272 = vmatpush3.bf16.msra.mxu1 %v2919_v44 }
0x1d76   : > { %3273 = vmatprep.subr.bf16.mxu1 %v3500_v1 }
0x1dab   : > { %v2262_v45 = vpop.f32.mrf.mxu1 }
0x1dad   : > { %v3225_v46 = vpop.f32.mrf.mxu1 }
0x1daf   : > { %v2265_v47 = vpop.f32.mrf.mxu1 }
0x1db1   : > { %v3226_v48 = vpop.f32.mrf.mxu1 }
0x1e24   : > { %v2373_v49 = vpop.f32.mrf.mxu1 }
0x1e25   : > { %2600 = vrot.lane.b32.xlu0 %v2373_v49, %s4190_s10 }
0x1e26   : > { %v3237_v50 = vpop.f32.mrf.mxu1 }
0x1e28   : > { %v2376_v51 = vpop.f32.mrf.mxu1 }
0x1e2a   : > { %v3238_v36 = vpop.f32.mrf.mxu1 }
0x1e2b   : > { %v2715_v36 = vld [vmem:[%s4165_s3 + $0x9] sm:$0x1] }
0x1e2c   : > { %v2483_v52 = vpop.f32.mrf.mxu1 }
0x1e2d   : > { %2604 = vrot.lane.b32.xlu1 %v2483_v52, %s4191_s11  ;;  %s186_s11 = sand.u32 1, %s3490_s16  }
0x1e2e   : > { %v3249_v6 = vpop.f32.mrf.mxu1  ;;  %s187_s29 = scalar_lea.vmem [#allocation2], %s186_s11  ;;  %s2780_s14 = scalar_lea.sflag [#allocation3], %s186_s11 }
0x1e2f   : > { %s2792_s5 = sshll.u32 %s187_s29, 4  ;;  %s2793_s5 = int_to_ptr.vmem [resolvable:$true] %s2792_s5 }
0x1e30   : > { %v2486_v53 = vpop.f32.mrf.mxu1  ;;  %s3438_s8 = scalar_lea.vmem %s2793_s5, 16  ;;  %p3445_p0 = scmp.lt.s32.totalorder %s2793_s5, %s3443_s20 }
0x1e31   : > { %p3439_p11 = scmp.ne.s32.totalorder %s2793_s5, %s3438_s8 }
0x1e32   : > { %v3250_v54 = vpop.f32.mrf.mxu1 }
0x1e33   : > { %p3440_p12 = pnand %p3439_p11, %p3580_p5 }
0x1e34   : > { %v2593_v55 = vpop.f32.mrf.mxu1 }
0x1e35   : > { %2608 = vrot.lane.b32.xlu0 %v2593_v55, %s4192_s30  ;;  %s2922_s30 = sshll.u32 %s3563_s19, 4  ;;  %p3441_p13 = pneg %p3440_p12 }
0x1e36   : > { %v3261_v56 = vpop.f32.mrf.mxu1  ;;  %s4127_s12 = scalar_lea.hbm %s4166_s4, %s2922_s30  ;;  %s3444_s19 = scalar_lea.vmem %s3443_s20, 32 }
0x1e37   : > { %p3446_p1 = scmp.lt.s32.totalorder %s3444_s19, %s3438_s8 }
0x1e38   : > { %v2596_v58 = vpop.f32.mrf.mxu1 }
0x1e39   : > { %p3447_p2 = por %p3446_p1, %p3445_p0 }
0x1e3a   : > { %v3262_v60 = vpop.f32.mrf.mxu1 }
0x1e3b   : > { %p3448_p3 = pnand %p3447_p2, %p3441_p13 }
0x1e97   : > { %v2601_v61 = vpop.permute.xlu0 %2600 }
0x1e98   : > { %v2611_v59 = vsel %vm281_vm3, %v2262_v45, %v2601_v61  ;;  %v2918_v45 = vcombine.low %v2711_v43, %v2712_v57 }
0x1e9a   : > { %3274 = vmatpush3.bf16.msra.mxu1 %v2918_v45 }
0x1e9f   : > { %v2605_v62 = vpop.permute.xlu1 %2604 }
0x1ea0   : > { %v2612_v63 = vsel %vm203_vm1, %v2611_v59, %v2605_v62 }
0x1ea7   : > { %v2609_v0 = vpop.permute.xlu0 %2608 }
0x1ea8   : > { %v2613_v2 = vsel %vm733_vm4, %v2612_v63, %v2609_v0 }
0x1ea9   : > { %v2614_v3 = vadd.f32 %v2613_v2, %v4002_v23  ;;  %v2615_v23 = vld [vmem:[%s4164_s2 + $0x18] sm:$0xf] }
0x1eaa   : > { %v2914_v16 = vcombine.low %v2615_v23, %v2616_v15 }
0x1eab   : > { %v2621_v4 = vsel %vm2620_vm7, %v2614_v3, 0.0 }
0x1eac   : > { %2622 = vadd.xlane.f32.xlu1 %v2621_v4  ;;  %3266 = vmatpush3.bf16.msra.mxu0 %v2914_v16 }
0x1f35   : > { %v2623_v5 = vpop.xlane.xlu1 %2622 }
0x1f36   : > { %v2624_v7 = vmul.f32 0.03125, %v2623_v5 }
0x1f38   : > { %v2625_v9 = vsub.f32 %v2614_v3, %v2624_v7 }
0x1f3a   : > { %v2626_v10 = vmul.f32 %v2625_v9, %v2625_v9 }
0x1f3c   : > { %v2627_v11 = vsel %vm2620_vm7, %v2626_v10, 0.0 }
0x1f3d   : > { %2628 = vadd.xlane.f32.xlu0 %v2627_v11 }
0x1fc6   : > { %v2629_v8 = vpop.xlane.xlu0 %2628 }
0x1fc7   : > { %v2630_v31 = vmul.f32 0.03125, %v2629_v8 }
0x1fc9   : > { %v2631_v17 = vadd.f32 1e-05, %v2630_v31 }
0x1fcb   : > { %3426 = vrsqrt.f32 %v2631_v17 }
0x1fd8   : > { %v3427_v18 = vpop.eup %3426 }
0x1fd9   : > { %v2633_v19 = vmul.f32 %v3427_v18, %v2625_v9 }
0x1fdb   : > { %v2634_v20 = vpack.c.bf16 %v2633_v19, %v2633_v19 }
0x1fdd   : > { %3268 = vmatmul.mubr.msk.bf16.vlgmr.msra.gmra.mxu0 %vm741_vm5, %v2634_v20 }
0x209d   : > { %v2684_v22 = vpop.f32.mrf.mxu0 }
0x209e   : > { %v2685_v24 = vadd.f32 %v2684_v22, %v2619_v21 }
0x209f   : > { %v3269_v25 = vpop.f32.mrf.mxu0 }
0x20a0   : > { %v2917_v26 = vmul.f32 -1.442695, %v2685_v24 }
0x20a1   : > { %v2687_v27 = vpop.f32.mrf.mxu0 }
0x20a2   : > { %3428 = vpow2.f32 %v2917_v26 }
0x20a3   : > { %v3270_v28 = vpop.f32.mrf.mxu0 }
0x20af   : > { %v3429_v30 = vpop.eup %3428 }
0x20b0   : > { %v2693_v32 = vadd.f32 1.0, %v3429_v30 }
0x20b2   : > { %3430 = vrcp.f32 %v2693_v32 }
0x20bf   : > { %v3431_v34 = vpop.eup %3430 }
0x20c0   : > { %v2696_v35 = vadd.f32 %v3431_v34, %v2633_v19 }
0x20c2   : > { %v2697_v37 = vsel %vm2620_vm7, %v2696_v35, 0.0 }
0x20c3   : > { %2698 = vadd.xlane.f32.xlu0 %v2697_v37 }
0x214c   : > { %v2699_v29 = vpop.xlane.xlu0 %2698 }
0x214d   : > { %v2700_v33 = vmul.f32 0.03125, %v2699_v29 }
0x214f   : > { %v2701_v38 = vsub.f32 %v2696_v35, %v2700_v33 }
0x2151   : > { %v2702_v39 = vmul.f32 %v2701_v38, %v2701_v38 }
0x2153   : > { %v2703_v40 = vsel %vm2620_vm7, %v2702_v39, 0.0 }
0x2154   : > { %2704 = vadd.xlane.f32.xlu1 %v2703_v40 }
0x21dd   : > { %v2705_v46 = vpop.xlane.xlu1 %2704 }
0x21de   : > { %v2706_v47 = vmul.f32 0.03125, %v2705_v46 }
0x21e0   : > { %v2707_v48 = vadd.f32 1e-05, %v2706_v47 }
0x21e2   : > { %3432 = vrsqrt.f32 %v2707_v48 }
0x21ef   : > { %v3433_v49 = vpop.eup %3432 }
0x21f0   : > { %v2709_v50 = vmul.f32 %v3433_v49, %v2701_v38 }
0x21f2   : > { %v2710_v51 = vpack.c.bf16 %v2709_v50, %v2709_v50 }
0x21f4   : > { %3276 = vmatmul.mubr.msk.bf16.vlgmr.msra.gmra.mxu1 %vm741_vm5, %v2710_v51 }
0x22b4   : > { %v2765_v52 = vpop.f32.mrf.mxu1 }
0x22b5   : > { %v2766_v6 = vadd.f32 %v2765_v52, %v2715_v36 }
0x22b6   : > { %v3277_v53 = vpop.f32.mrf.mxu1 }
0x22b7   : > { %v2921_v1 = vmul.f32 -1.442695, %v2766_v6 }
0x22b8   : > { %v2768_v54 = vpop.f32.mrf.mxu1 }
0x22b9   : > { %3434 = vpow2.f32 %v2921_v1 }
0x22ba   : > { %v3278_v55 = vpop.f32.mrf.mxu1 }
0x22c6   : > { %v3435_v56 = vpop.eup %3434 }
0x22c7   : > { %v2774_v58 = vadd.f32 1.0, %v3435_v56 }
0x22c9   : > { %3436 = vrcp.f32 %v2774_v58 }
0x22d6   : > { %v3437_v60 = vpop.eup %3436 }
0x22d7   : > { %2778 = vst.msk [vmem:[%s187_s29] sm:$0x1] %vm2777_vm8, %v3437_v60 }
0x22d8   : > { %3451 = shalt.err (!%p3448_p3)
}
0x22d9   : > { %s3452_s23 = scalar_lea.hbm %s4127_s12, 16  ;;  %s3456_s22 = scalar_lea.hbm %s4166_s4, 32 }
0x22da   : > { %p3453_p4 = scmp.ne.s32.totalorder %s4127_s12, %s3452_s23  ;;  %p3457_p9 = scmp.lt.s32.totalorder %s4127_s12, %s4166_s4 }
0x22db   : > { %p3458_p10 = scmp.lt.s32.totalorder %s3456_s22, %s3452_s23 }
0x22dc   : > { %p3454_p7 = pnand %p3453_p4, %p3580_p5 }
0x22dd   : > { %p3459_p11 = por %p3458_p10, %p3457_p9 }
0x22de   : > { %p3455_p8 = pneg %p3454_p7 }
0x22e0   : > { %p3460_p12 = pnand %p3459_p11, %p3455_p8 }
0x22e2   : > { %3463 = shalt.err (!%p3460_p12)
}
0x22e3   : > { %3279 = dma.vmem_to_hbm [thread:$0]  (%p3580_p5), %s2793_s5, 16, %s4127_s12, %s2780_s14  }
0x22e4 PF: > { %p3285_p13 = scmp.ge.s32.totalorder %s3498_s18, 2  ;;  %s2804_s11 = sand.u32 1, %s3486_s15  }
0x22e5   : > { %s2805_s30 = scalar_lea.sflag [#allocation3], %s2804_s11 }
0x22e6   : > { %p3282_p0 = pnand %p3285_p13, %p3584_p6 }
0x22e8   : > { %p3283_p1 = pneg %p3282_p0 }
0x22ea   : > { %3481 = dma.done.wait (%p3283_p1), %s2805_s30, 16  }
0x22eb   : > { %3483 = vsyncadd (%p3283_p1), %s2805_s30, 4294967280  ;;  %p14_p2 = scmp.ge.s32.totalorder %s3567_s21, 4   ;;  %s4199_s15 = smov %s3490_s16 }
0x22ec   : > { %s4200_s16 = smov %s3494_s17  ;;  %s4201_s17 = smov %s3578_s24 }
0x22ed   : > { %s4202_s18 = smov %s3567_s21  ;;  %16 = sbr.rel (!%p14_p2) target bundleno = 3 (0x3), region = 71 }
0x22f2   :  { %2809 = vsyncpa [#allocation3], 1 }
0x22f3   :  { %2811 = vsyncpa [#allocation3 + $0x1], 1 }

</bundles_post_ra>
